<compile_context>
chip_gen: v6e
topology: v6e:2x2x1
jax: 0.10.0
libtpu: 0.0.40
codegen_flags: <defaults>
</compile_context>

<pallas_src>
import functools

import jax
import jax.numpy as jnp
from jax.experimental import pallas as pl
from jax.experimental.pallas import tpu as pltpu


_MXU_DTYPE = jnp.bfloat16   # HBM activations / matmul weights; accumulate in f32


def _round_up(x, m):
    return ((x + m - 1) // m) * m


def _pick_tile(dim, candidates, min_steps=1):
    """Largest candidate evenly dividing `dim` (preferring >= min_steps grid
    steps so both v7x TensorCores get work); falls back to the full dim."""
    for c in candidates:
        if c <= dim and dim % c == 0 and dim // c >= min_steps:
            return c
    for c in candidates:
        if c <= dim and dim % c == 0:
            return c
    return dim


# ---------------------------------------------------------------------------
# Fused QKV projection:
#   out[0] = (x+pos) @ Wq + bq ; out[1] = (x+pos) @ Wk + bk ; out[2] = x @ Wv + bv
# One grid step computes all three matmuls (pos add done once per (i,k) tile).
# ---------------------------------------------------------------------------

def _qkv_kernel(x_ref, pos_ref, w_ref, b_ref, o_ref, acc_ref):
    k_idx = pl.program_id(2)

    @pl.when(k_idx == 0)
    def _():
        acc_ref[...] = jnp.zeros_like(acc_ref)

    x = x_ref[...]                                             # (tm, tk) bf16
    xqk = (x.astype(jnp.float32) + pos_ref[...].astype(jnp.float32)
           ).astype(_MXU_DTYPE)

    acc_ref[0] += jnp.dot(xqk, w_ref[0], preferred_element_type=jnp.float32)
    acc_ref[1] += jnp.dot(xqk, w_ref[1], preferred_element_type=jnp.float32)
    acc_ref[2] += jnp.dot(x, w_ref[2], preferred_element_type=jnp.float32)

    @pl.when(k_idx == pl.num_programs(2) - 1)
    def _():
        for m in range(3):                                     # static unroll
            o_ref[m] = (acc_ref[m] + b_ref[m].astype(jnp.float32)
                        ).astype(o_ref.dtype)


def qkv_projection(x2d, pos2d, w_qkv, b_qkv, *, tm, tn, tk):
    # x2d, pos2d: (M, D) bf16; w_qkv: (3, D, D) bf16; b_qkv: (3, 1, D) f32
    M, D = x2d.shape
    grid = (M // tm, D // tn, D // tk)
    flops = 2 * M * D * D * 3
    bytes_accessed = (2 * M * D * x2d.dtype.itemsize
                      + 3 * D * D * w_qkv.dtype.itemsize
                      + 3 * D * b_qkv.dtype.itemsize
                      + 3 * M * D * 2)
    return pl.pallas_call(
        _qkv_kernel,
        out_shape=jax.ShapeDtypeStruct((3, M, D), _MXU_DTYPE),
        grid=grid,
        in_specs=[
            pl.BlockSpec((tm, tk), lambda i, j, k: (i, k)),
            pl.BlockSpec((tm, tk), lambda i, j, k: (i, k)),
            pl.BlockSpec((3, tk, tn), lambda i, j, k: (0, k, j)),
            pl.BlockSpec((3, 1, tn), lambda i, j, k: (0, 0, j)),
        ],
        out_specs=pl.BlockSpec((3, tm, tn), lambda i, j, k: (0, i, j)),
        scratch_shapes=[pltpu.VMEM((3, tm, tn), jnp.float32)],
        compiler_params=pltpu.CompilerParams(
            dimension_semantics=("parallel", "parallel", "arbitrary")),
        cost_estimate=pl.CostEstimate(flops=flops, transcendentals=0,
                                      bytes_accessed=bytes_accessed),
    )(x2d, pos2d, w_qkv, b_qkv)


# ---------------------------------------------------------------------------
# Multi-head attention on lane-dense (rows, D) blocks (heads split in-kernel).
# Per-head results land in a (tq, D) f32 VMEM scratch; one lane-dense store.
# ---------------------------------------------------------------------------

def _attn_kernel(q_ref, k_ref, v_ref, o_ref, acc_ref, *, nheads, s_valid):
    # q_ref: (tq, D) bf16 (scale already folded into Wq); k/v_ref: (S_pad, D)
    D = q_ref.shape[-1]
    S_pad = k_ref.shape[0]
    hd = D // nheads

    key_mask = None
    if S_pad > s_valid:  # static: mask the zero-padded key rows
        key_mask = jax.lax.broadcasted_iota(jnp.int32, (1, S_pad), 1) < s_valid

    # TODO(synk): the per-head QK^T contracts only hd lanes (underfills the
    # 256-deep v6e/v7x MXU) and may relayout K; switch to an online-softmax
    # (flash) KV tiling with pre-transposed K for large S (earlier on v7x).
    for h in range(nheads):                      # static unroll over heads
        lo = h * hd
        qh = q_ref[:, lo:lo + hd]                # (tq, hd) bf16
        kh = k_ref[:, lo:lo + hd]                # (S_pad, hd) bf16
        s = jax.lax.dot_general(qh, kh, (((1,), (1,)), ((), ())),
                                preferred_element_type=jnp.float32)  # (tq, S_pad)
        if key_mask is not None:
            s = jnp.where(key_mask, s, -1e30)
        m = jnp.max(s, axis=-1, keepdims=True)
        p = jnp.exp(s - m)
        denom = jnp.sum(p, axis=-1, keepdims=True)
        p = p * pl.reciprocal(denom, approx=True)
        acc_ref[:, lo:lo + hd] = jnp.dot(p.astype(_MXU_DTYPE),
                                         v_ref[:, lo:lo + hd],
                                         preferred_element_type=jnp.float32)

    o_ref[...] = acc_ref[...].astype(o_ref.dtype)   # single lane-dense store


def mha_attention(qkv4, nheads, s_valid, *, tq):
    # qkv4: (3, B, S_pad, D) bf16 -> (B, S_pad, D) bf16
    _, B, S_pad, D = qkv4.shape
    grid = (B, S_pad // tq)
    return pl.pallas_call(
        functools.partial(_attn_kernel, nheads=nheads, s_valid=s_valid),
        out_shape=jax.ShapeDtypeStruct((B, S_pad, D), qkv4.dtype),
        grid=grid,
        in_specs=[
            pl.BlockSpec((None, None, tq, D), lambda b, i: (0, b, i, 0)),
            pl.BlockSpec((None, None, S_pad, D), lambda b, i: (1, b, 0, 0)),
            pl.BlockSpec((None, None, S_pad, D), lambda b, i: (2, b, 0, 0)),
        ],
        out_specs=pl.BlockSpec((None, tq, D), lambda b, i: (b, i, 0)),
        scratch_shapes=[pltpu.VMEM((tq, D), jnp.float32)],
        compiler_params=pltpu.CompilerParams(
            dimension_semantics=("parallel", "parallel"),
            vmem_limit_bytes=48 * 1024 * 1024),
    )(qkv4, qkv4, qkv4)


# ---------------------------------------------------------------------------
# Tiled linear (+ bias, optional ReLU) with f32 accumulator
# ---------------------------------------------------------------------------

def _linear_kernel(x_ref, w_ref, b_ref, o_ref, acc_ref, *, activation):
    k_idx = pl.program_id(2)

    @pl.when(k_idx == 0)
    def _():
        acc_ref[...] = jnp.zeros_like(acc_ref)

    acc_ref[...] += jnp.dot(x_ref[...], w_ref[...],
                            preferred_element_type=jnp.float32)

    @pl.when(k_idx == pl.num_programs(2) - 1)
    def _():
        y = acc_ref[...] + b_ref[...].astype(jnp.float32)
        if activation == "relu":
            y = jnp.maximum(y, 0.0)
        o_ref[...] = y.astype(o_ref.dtype)


def linear(x2d, w, b, *, activation=None, tm, tn, tk):
    M, K = x2d.shape
    N = w.shape[1]
    grid = (M // tm, N // tn, K // tk)
    flops = 2 * M * N * K
    bytes_accessed = (M * K * x2d.dtype.itemsize + K * N * w.dtype.itemsize
                      + N * b.dtype.itemsize + M * N * 2)
    return pl.pallas_call(
        functools.partial(_linear_kernel, activation=activation),
        out_shape=jax.ShapeDtypeStruct((M, N), _MXU_DTYPE),
        grid=grid,
        in_specs=[
            pl.BlockSpec((tm, tk), lambda i, j, k: (i, k)),
            pl.BlockSpec((tk, tn), lambda i, j, k: (k, j)),
            pl.BlockSpec((1, tn), lambda i, j, k: (0, j)),
        ],
        out_specs=pl.BlockSpec((tm, tn), lambda i, j, k: (i, j)),
        scratch_shapes=[pltpu.VMEM((tm, tn), jnp.float32)],
        compiler_params=pltpu.CompilerParams(
            dimension_semantics=("parallel", "parallel", "arbitrary")),
        cost_estimate=pl.CostEstimate(flops=flops, transcendentals=0,
                                      bytes_accessed=bytes_accessed),
    )(x2d, w, b)


# ---------------------------------------------------------------------------
# Fused:  out = LayerNorm( (x @ W + b) + residual )   (N is not tiled: N = D)
# ---------------------------------------------------------------------------

def _linear_res_ln_kernel(x_ref, w_ref, b_ref, res_ref, g_ref, bta_ref,
                          o_ref, acc_ref, *, eps):
    k_idx = pl.program_id(1)

    @pl.when(k_idx == 0)
    def _():
        acc_ref[...] = jnp.zeros_like(acc_ref)

    acc_ref[...] += jnp.dot(x_ref[...], w_ref[...],
                            preferred_element_type=jnp.float32)

    @pl.when(k_idx == pl.num_programs(1) - 1)
    def _():
        y = (acc_ref[...] + b_ref[...].astype(jnp.float32)
             + res_ref[...].astype(jnp.float32))
        mean = jnp.mean(y, axis=-1, keepdims=True)
        var = jnp.mean(jnp.square(y - mean), axis=-1, keepdims=True)
        y = (y - mean) * jax.lax.rsqrt(var + eps)
        y = y * g_ref[...].astype(jnp.float32) + bta_ref[...].astype(jnp.float32)
        o_ref[...] = y.astype(o_ref.dtype)


def linear_residual_layernorm(x2d, w, b, res2d, gamma, beta, *, eps=1e-5, tm, tk):
    M, K = x2d.shape
    N = w.shape[1]
    grid = (M // tm, K // tk)
    flops = 2 * M * N * K + 10 * M * N
    bytes_accessed = (M * K * x2d.dtype.itemsize + K * N * w.dtype.itemsize
                      + M * N * res2d.dtype.itemsize + M * N * 2
                      + 3 * N * 4)
    return pl.pallas_call(
        functools.partial(_linear_res_ln_kernel, eps=eps),
        out_shape=jax.ShapeDtypeStruct((M, N), _MXU_DTYPE),
        grid=grid,
        in_specs=[
            pl.BlockSpec((tm, tk), lambda i, k: (i, k)),
            pl.BlockSpec((tk, N), lambda i, k: (k, 0)),
            pl.BlockSpec((1, N), lambda i, k: (0, 0)),
            pl.BlockSpec((tm, N), lambda i, k: (i, 0)),
            pl.BlockSpec((1, N), lambda i, k: (0, 0)),
            pl.BlockSpec((1, N), lambda i, k: (0, 0)),
        ],
        out_specs=pl.BlockSpec((tm, N), lambda i, k: (i, 0)),
        scratch_shapes=[pltpu.VMEM((tm, N), jnp.float32)],
        compiler_params=pltpu.CompilerParams(
            dimension_semantics=("parallel", "arbitrary")),
        cost_estimate=pl.CostEstimate(flops=flops, transcendentals=0,
                                      bytes_accessed=bytes_accessed),
    )(x2d, w, b, res2d, gamma, beta)


# ---------------------------------------------------------------------------
# Plain row-tiled LayerNorm (final norm; no residual)
# ---------------------------------------------------------------------------

def _layernorm_kernel(x_ref, g_ref, b_ref, o_ref, *, eps):
    x = x_ref[...].astype(jnp.float32)
    mean = jnp.mean(x, axis=-1, keepdims=True)
    var = jnp.mean(jnp.square(x - mean), axis=-1, keepdims=True)
    y = (x - mean) * jax.lax.rsqrt(var + eps)
    y = y * g_ref[...].astype(jnp.float32) + b_ref[...].astype(jnp.float32)
    o_ref[...] = y.astype(o_ref.dtype)


def layernorm(x2d, gamma, beta, *, eps=1e-5, tm, out_dtype):
    M, D = x2d.shape
    grid = (M // tm,)
    return pl.pallas_call(
        functools.partial(_layernorm_kernel, eps=eps),
        out_shape=jax.ShapeDtypeStruct((M, D), out_dtype),
        grid=grid,
        in_specs=[
            pl.BlockSpec((tm, D), lambda i: (i, 0)),
            pl.BlockSpec((1, D), lambda i: (0, 0)),
            pl.BlockSpec((1, D), lambda i: (0, 0)),
        ],
        out_specs=pl.BlockSpec((tm, D), lambda i: (i, 0)),
        compiler_params=pltpu.CompilerParams(dimension_semantics=("parallel",)),
    )(x2d, gamma, beta)


# ---------------------------------------------------------------------------
# Encoder layer / encoder stack
# ---------------------------------------------------------------------------

def encoder_layer(x2d, pos2d, p, nhead, B, S_pad, S, D, t):
    M = x2d.shape[0]

    qkv = qkv_projection(x2d, pos2d, p["w_qkv"], p["b_qkv"],
                         tm=t["tm"], tn=t["tn_d"], tk=t["tk_d"])
    qkv4 = qkv.reshape(3, B, S_pad, D)           # free row-major reshape

    attn = mha_attention(qkv4, nhead, S, tq=t["tq"]).reshape(M, D)

    # out-proj + residual + LayerNorm1 fused
    x1 = linear_residual_layernorm(attn, p["wo"], p["bo"], x2d,
                                   p["ln1_g"], p["ln1_b"],
                                   tm=t["tm"], tk=t["tk_d"])

    # FFN: linear1 + ReLU, then linear2 + residual + LayerNorm2 fused
    h = linear(x1, p["w1"], p["b1"], activation="relu",
               tm=t["tm"], tn=t["tn_ff"], tk=t["tk_d"])
    x2 = linear_residual_layernorm(h, p["w2"], p["b2"], x1,
                                   p["ln2_g"], p["ln2_b"],
                                   tm=t["tm"], tk=t["tk_ff"])
    return x2


def transformer_encoder(src, pos_embed, layer_params, final_norm, nhead):
    # src, pos_embed: (B, S, D) f32
    B, S, D = src.shape
    out_dtype = src.dtype
    FF = layer_params[0]["w1"].shape[1]

    # Pad S so row/query tiles pipeline well (128 for long DETR sequences).
    s_tile = 128 if S >= 128 else _round_up(S, 8)
    S_pad = _round_up(S, s_tile)
    M_pad = B * S_pad

    tq = s_tile
    if B == 1 and S_pad == tq and S_pad % 16 == 0:
        tq = S_pad // 2          # keep both v7x TensorCores busy at batch 1

    tiles = dict(
        tm=_pick_tile(M_pad, (512, 256, 128, 64, 32, 16, 8), min_steps=2),
        tq=tq,
        tn_d=_pick_tile(D, (256, 128)),
        tk_d=_pick_tile(D, (512, 256, 128)),
        tn_ff=_pick_tile(FF, (512, 256, 128)),
        tk_ff=_pick_tile(FF, (512, 256, 128)),
    )

    if S_pad != S:
        pad = ((0, 0), (0, S_pad - S), (0, 0))
        src = jnp.pad(src, pad)
        pos_embed = jnp.pad(pos_embed, pad)

    x = src.reshape(M_pad, D).astype(_MXU_DTYPE)
    pos = pos_embed.reshape(M_pad, D).astype(_MXU_DTYPE)

    for p in layer_params:
        x = encoder_layer(x, pos, p, nhead, B, S_pad, S, D, tiles)

    if final_norm is not None:
        x = layernorm(x, final_norm["g"], final_norm["b"],
                      tm=tiles["tm"], out_dtype=out_dtype)
    return x.reshape(B, S_pad, D)[:, :S, :].astype(out_dtype)


# ---------------------------------------------------------------------------
# Parameter prep: bf16 matmul weights, f32 biases/LN params, attention scale
# folded into Wq / bq (q = (x+pos) @ (scale*Wq) + scale*bq).
# ---------------------------------------------------------------------------

def prepare_params(layer_params, final_norm, nhead):
    prepped = []
    for p in layer_params:
        d_model = p["w_qkv"].shape[-1]
        scale = float(d_model // nhead) ** -0.5
        fold = jnp.array([scale, 1.0, 1.0], jnp.float32)[:, None, None]
        prepped.append(dict(
            w_qkv=(p["w_qkv"].astype(jnp.float32) * fold).astype(_MXU_DTYPE),
            b_qkv=(p["b_qkv"].astype(jnp.float32) * fold),
            wo=p["wo"].astype(_MXU_DTYPE),
            bo=p["bo"].astype(jnp.float32),
            ln1_g=p["ln1_g"].astype(jnp.float32),
            ln1_b=p["ln1_b"].astype(jnp.float32),
            w1=p["w1"].astype(_MXU_DTYPE),
            b1=p["b1"].astype(jnp.float32),
            w2=p["w2"].astype(_MXU_DTYPE),
            b2=p["b2"].astype(jnp.float32),
            ln2_g=p["ln2_g"].astype(jnp.float32),
            ln2_b=p["ln2_b"].astype(jnp.float32),
        ))
    fn = None
    if final_norm is not None:
        fn = dict(g=final_norm["g"].astype(jnp.float32),
                  b=final_norm["b"].astype(jnp.float32))
    return prepped, fn


# ---------------------------------------------------------------------------
# Deterministic synthetic init (shapes follow nn.TransformerEncoderLayer)
# ---------------------------------------------------------------------------

def init_layer_params(key, d_model, dim_ff):
    ks = jax.random.split(key, 4)
    s = 0.1
    f32 = jnp.float32
    return dict(
        w_qkv=s * jax.random.normal(ks[0], (3, d_model, d_model), f32),
        b_qkv=jnp.zeros((3, 1, d_model), f32),
        wo=s * jax.random.normal(ks[1], (d_model, d_model), f32),
        bo=jnp.zeros((1, d_model), f32),
        ln1_g=jnp.ones((1, d_model), f32),
        ln1_b=jnp.zeros((1, d_model), f32),
        w1=s * jax.random.normal(ks[2], (d_model, dim_ff), f32),
        b1=jnp.zeros((1, dim_ff), f32),
        w2=s * jax.random.normal(ks[3], (dim_ff, d_model), f32),
        b2=jnp.zeros((1, d_model), f32),
        ln2_g=jnp.ones((1, d_model), f32),
        ln2_b=jnp.zeros((1, d_model), f32),
    )


if __name__ == "__main__":
    B, S, D, H, FF, L = 2, 8, 32, 4, 64, 2
    key = jax.random.PRNGKey(0)
    kx, kp, kparam = jax.random.split(key, 3)

    src = jax.random.normal(kx, (B, S, D), jnp.float32)        # layout: (B, S, D)
    pos_embed = jax.random.normal(kp, (B, S, D), jnp.float32)

    layer_keys = jax.random.split(kparam, L)
    layers = [init_layer_params(k, D, FF) for k in layer_keys]
    final_norm = dict(g=jnp.ones((1, D), jnp.float32),
                      b=jnp.zeros((1, D), jnp.float32))

    layers, final_norm = prepare_params(layers, final_norm, nhead=H)

    fwd = jax.jit(transformer_encoder, static_argnums=(4,))
    out = fwd(src, pos_embed, layers, final_norm, H)
    out = jax.block_until_ready(out)

    assert out.shape == (B, S, D)
    assert bool(jnp.all(jnp.isfinite(out)))
    print("KERNEL_OK")
</pallas_src>

<mosaic_0001>
module attributes {stable_mosaic.version = 11 : i64} {
  func.func @_attn_kernel(%arg0: i32, %arg1: i32, %arg2: memref<1x1x8x32xbf16, #tpu.memory_space<vmem>>, %arg3: memref<1x1x8x32xbf16, #tpu.memory_space<vmem>>, %arg4: memref<1x1x8x32xbf16, #tpu.memory_space<vmem>>, %arg5: memref<1x8x32xbf16, #tpu.memory_space<vmem>>, %arg6: memref<8x32xf32, #tpu.memory_space<vmem>>) attributes {dimension_semantics = [#tpu.dimension_semantics<parallel>, #tpu.dimension_semantics<parallel>], iteration_bounds = array<i64: 2, 1>, scalar_prefetch = 0 : i64, scratch_operands = 1 : i64, tpu.core_type = #tpu.core_type<tc>, window_params = [{transform_indices = @transform_0, window_bounds = array<i64: 1, 1, 8, 32>}, {transform_indices = @transform_1, window_bounds = array<i64: 1, 1, 8, 32>}, {transform_indices = @transform_2, window_bounds = array<i64: 1, 1, 8, 32>}, {transform_indices = @transform_3, window_bounds = array<i64: 1, 8, 32>}]} {
    %c0 = arith.constant 0 : index
    %c0_0 = arith.constant 0 : index
    %c0_1 = arith.constant 0 : index
    %c0_2 = arith.constant 0 : index
    %0 = vector.load %arg2[%c0, %c0_0, %c0_1, %c0_2] : memref<1x1x8x32xbf16, #tpu.memory_space<vmem>>, vector<1x1x8x8xbf16>
    %1 = vector.shape_cast %0 : vector<1x1x8x8xbf16> to vector<8x8xbf16>
    %c0_3 = arith.constant 0 : index
    %c0_4 = arith.constant 0 : index
    %c0_5 = arith.constant 0 : index
    %c0_6 = arith.constant 0 : index
    %2 = vector.load %arg3[%c0_3, %c0_4, %c0_5, %c0_6] : memref<1x1x8x32xbf16, #tpu.memory_space<vmem>>, vector<1x1x8x8xbf16>
    %3 = vector.shape_cast %2 : vector<1x1x8x8xbf16> to vector<8x8xbf16>
    %cst = arith.constant dense<0.000000e+00> : vector<8x8xf32>
    %4 = tpu.matmul %1, %3, %cst {dimension_numbers = #tpu.dot_dimension_numbers<[1], [1], [0], [0], [0, 0, 1, 0], [], []>} : vector<8x8xbf16>, vector<8x8xbf16>, vector<8x8xf32> -> vector<8x8xf32>
    %cst_7 = arith.constant dense<0xFF800000> : vector<8xf32>
    %5 = vector.multi_reduction <maximumf>, %4, %cst_7 [1] : vector<8x8xf32> to vector<8xf32>
    %6 = vector.shape_cast %5 : vector<8xf32> to vector<8x1xf32>
    %7 = vector.broadcast %6 : vector<8x1xf32> to vector<8x8xf32>
    %8 = arith.subf %4, %7 : vector<8x8xf32>
    %9 = math.exp %8 : vector<8x8xf32>
    %cst_8 = arith.constant dense<0.000000e+00> : vector<8xf32>
    %10 = vector.multi_reduction <add>, %9, %cst_8 [1] : vector<8x8xf32> to vector<8xf32>
    %11 = vector.shape_cast %10 : vector<8xf32> to vector<8x1xf32>
    %12 = tpu.reciprocal %11 {approx = true} : vector<8x1xf32> -> vector<8x1xf32>
    %13 = vector.broadcast %12 : vector<8x1xf32> to vector<8x8xf32>
    %14 = arith.mulf %9, %13 : vector<8x8xf32>
    %15 = arith.truncf %14 : vector<8x8xf32> to vector<8x8xbf16>
    %c0_9 = arith.constant 0 : index
    %c0_10 = arith.constant 0 : index
    %c0_11 = arith.constant 0 : index
    %c0_12 = arith.constant 0 : index
    %16 = vector.load %arg4[%c0_9, %c0_10, %c0_11, %c0_12] : memref<1x1x8x32xbf16, #tpu.memory_space<vmem>>, vector<1x1x8x8xbf16>
    %17 = vector.shape_cast %16 : vector<1x1x8x8xbf16> to vector<8x8xbf16>
    %cst_13 = arith.constant dense<0.000000e+00> : vector<8x8xf32>
    %18 = tpu.matmul %15, %17, %cst_13 {dimension_numbers = #tpu.dot_dimension_numbers<[1], [0], [0], [1], [0, 0, 1, 1], [], []>} : vector<8x8xbf16>, vector<8x8xbf16>, vector<8x8xf32> -> vector<8x8xf32>
    %c0_14 = arith.constant 0 : index
    %c0_15 = arith.constant 0 : index
    %19 = vector.load %arg6[%c0_14, %c0_15] : memref<8x32xf32, #tpu.memory_space<vmem>>, vector<8x8xf32>
    tpu.vector_store %arg6[%c0_14, %c0_15], %18 {strides = array<i32>} : memref<8x32xf32, #tpu.memory_space<vmem>>, vector<8x8xf32>,
    %c0_16 = arith.constant 0 : index
    %c0_17 = arith.constant 0 : index
    %c0_18 = arith.constant 0 : index
    %c8 = arith.constant 8 : index
    %20 = vector.load %arg2[%c0_16, %c0_17, %c0_18, %c8] : memref<1x1x8x32xbf16, #tpu.memory_space<vmem>>, vector<1x1x8x8xbf16>
    %21 = vector.shape_cast %20 : vector<1x1x8x8xbf16> to vector<8x8xbf16>
    %c0_19 = arith.constant 0 : index
    %c0_20 = arith.constant 0 : index
    %c0_21 = arith.constant 0 : index
    %c8_22 = arith.constant 8 : index
    %22 = vector.load %arg3[%c0_19, %c0_20, %c0_21, %c8_22] : memref<1x1x8x32xbf16, #tpu.memory_space<vmem>>, vector<1x1x8x8xbf16>
    %23 = vector.shape_cast %22 : vector<1x1x8x8xbf16> to vector<8x8xbf16>
    %cst_23 = arith.constant dense<0.000000e+00> : vector<8x8xf32>
    %24 = tpu.matmul %21, %23, %cst_23 {dimension_numbers = #tpu.dot_dimension_numbers<[1], [1], [0], [0], [0, 0, 1, 0], [], []>} : vector<8x8xbf16>, vector<8x8xbf16>, vector<8x8xf32> -> vector<8x8xf32>
    %cst_24 = arith.constant dense<0xFF800000> : vector<8xf32>
    %25 = vector.multi_reduction <maximumf>, %24, %cst_24 [1] : vector<8x8xf32> to vector<8xf32>
    %26 = vector.shape_cast %25 : vector<8xf32> to vector<8x1xf32>
    %27 = vector.broadcast %26 : vector<8x1xf32> to vector<8x8xf32>
    %28 = arith.subf %24, %27 : vector<8x8xf32>
    %29 = math.exp %28 : vector<8x8xf32>
    %cst_25 = arith.constant dense<0.000000e+00> : vector<8xf32>
    %30 = vector.multi_reduction <add>, %29, %cst_25 [1] : vector<8x8xf32> to vector<8xf32>
    %31 = vector.shape_cast %30 : vector<8xf32> to vector<8x1xf32>
    %32 = tpu.reciprocal %31 {approx = true} : vector<8x1xf32> -> vector<8x1xf32>
    %33 = vector.broadcast %32 : vector<8x1xf32> to vector<8x8xf32>
    %34 = arith.mulf %29, %33 : vector<8x8xf32>
    %35 = arith.truncf %34 : vector<8x8xf32> to vector<8x8xbf16>
    %c0_26 = arith.constant 0 : index
    %c0_27 = arith.constant 0 : index
    %c0_28 = arith.constant 0 : index
    %c8_29 = arith.constant 8 : index
    %36 = vector.load %arg4[%c0_26, %c0_27, %c0_28, %c8_29] : memref<1x1x8x32xbf16, #tpu.memory_space<vmem>>, vector<1x1x8x8xbf16>
    %37 = vector.shape_cast %36 : vector<1x1x8x8xbf16> to vector<8x8xbf16>
    %cst_30 = arith.constant dense<0.000000e+00> : vector<8x8xf32>
    %38 = tpu.matmul %35, %37, %cst_30 {dimension_numbers = #tpu.dot_dimension_numbers<[1], [0], [0], [1], [0, 0, 1, 1], [], []>} : vector<8x8xbf16>, vector<8x8xbf16>, vector<8x8xf32> -> vector<8x8xf32>
    %c0_31 = arith.constant 0 : index
    %c8_32 = arith.constant 8 : index
    %39 = vector.load %arg6[%c0_31, %c8_32] : memref<8x32xf32, #tpu.memory_space<vmem>>, vector<8x8xf32>
    tpu.vector_store %arg6[%c0_31, %c8_32], %38 {strides = array<i32>} : memref<8x32xf32, #tpu.memory_space<vmem>>, vector<8x8xf32>,
    %c0_33 = arith.constant 0 : index
    %c0_34 = arith.constant 0 : index
    %c0_35 = arith.constant 0 : index
    %c16 = arith.constant 16 : index
    %40 = vector.load %arg2[%c0_33, %c0_34, %c0_35, %c16] : memref<1x1x8x32xbf16, #tpu.memory_space<vmem>>, vector<1x1x8x8xbf16>
    %41 = vector.shape_cast %40 : vector<1x1x8x8xbf16> to vector<8x8xbf16>
    %c0_36 = arith.constant 0 : index
    %c0_37 = arith.constant 0 : index
    %c0_38 = arith.constant 0 : index
    %c16_39 = arith.constant 16 : index
    %42 = vector.load %arg3[%c0_36, %c0_37, %c0_38, %c16_39] : memref<1x1x8x32xbf16, #tpu.memory_space<vmem>>, vector<1x1x8x8xbf16>
    %43 = vector.shape_cast %42 : vector<1x1x8x8xbf16> to vector<8x8xbf16>
    %cst_40 = arith.constant dense<0.000000e+00> : vector<8x8xf32>
    %44 = tpu.matmul %41, %43, %cst_40 {dimension_numbers = #tpu.dot_dimension_numbers<[1], [1], [0], [0], [0, 0, 1, 0], [], []>} : vector<8x8xbf16>, vector<8x8xbf16>, vector<8x8xf32> -> vector<8x8xf32>
    %cst_41 = arith.constant dense<0xFF800000> : vector<8xf32>
    %45 = vector.multi_reduction <maximumf>, %44, %cst_41 [1] : vector<8x8xf32> to vector<8xf32>
    %46 = vector.shape_cast %45 : vector<8xf32> to vector<8x1xf32>
    %47 = vector.broadcast %46 : vector<8x1xf32> to vector<8x8xf32>
    %48 = arith.subf %44, %47 : vector<8x8xf32>
    %49 = math.exp %48 : vector<8x8xf32>
    %cst_42 = arith.constant dense<0.000000e+00> : vector<8xf32>
    %50 = vector.multi_reduction <add>, %49, %cst_42 [1] : vector<8x8xf32> to vector<8xf32>
    %51 = vector.shape_cast %50 : vector<8xf32> to vector<8x1xf32>
    %52 = tpu.reciprocal %51 {approx = true} : vector<8x1xf32> -> vector<8x1xf32>
    %53 = vector.broadcast %52 : vector<8x1xf32> to vector<8x8xf32>
    %54 = arith.mulf %49, %53 : vector<8x8xf32>
    %55 = arith.truncf %54 : vector<8x8xf32> to vector<8x8xbf16>
    %c0_43 = arith.constant 0 : index
    %c0_44 = arith.constant 0 : index
    %c0_45 = arith.constant 0 : index
    %c16_46 = arith.constant 16 : index
    %56 = vector.load %arg4[%c0_43, %c0_44, %c0_45, %c16_46] : memref<1x1x8x32xbf16, #tpu.memory_space<vmem>>, vector<1x1x8x8xbf16>
    %57 = vector.shape_cast %56 : vector<1x1x8x8xbf16> to vector<8x8xbf16>
    %cst_47 = arith.constant dense<0.000000e+00> : vector<8x8xf32>
    %58 = tpu.matmul %55, %57, %cst_47 {dimension_numbers = #tpu.dot_dimension_numbers<[1], [0], [0], [1], [0, 0, 1, 1], [], []>} : vector<8x8xbf16>, vector<8x8xbf16>, vector<8x8xf32> -> vector<8x8xf32>
    %c0_48 = arith.constant 0 : index
    %c16_49 = arith.constant 16 : index
    %59 = vector.load %arg6[%c0_48, %c16_49] : memref<8x32xf32, #tpu.memory_space<vmem>>, vector<8x8xf32>
    tpu.vector_store %arg6[%c0_48, %c16_49], %58 {strides = array<i32>} : memref<8x32xf32, #tpu.memory_space<vmem>>, vector<8x8xf32>,
    %c0_50 = arith.constant 0 : index
    %c0_51 = arith.constant 0 : index
    %c0_52 = arith.constant 0 : index
    %c24 = arith.constant 24 : index
    %60 = vector.load %arg2[%c0_50, %c0_51, %c0_52, %c24] : memref<1x1x8x32xbf16, #tpu.memory_space<vmem>>, vector<1x1x8x8xbf16>
    %61 = vector.shape_cast %60 : vector<1x1x8x8xbf16> to vector<8x8xbf16>
    %c0_53 = arith.constant 0 : index
    %c0_54 = arith.constant 0 : index
    %c0_55 = arith.constant 0 : index
    %c24_56 = arith.constant 24 : index
    %62 = vector.load %arg3[%c0_53, %c0_54, %c0_55, %c24_56] : memref<1x1x8x32xbf16, #tpu.memory_space<vmem>>, vector<1x1x8x8xbf16>
    %63 = vector.shape_cast %62 : vector<1x1x8x8xbf16> to vector<8x8xbf16>
    %cst_57 = arith.constant dense<0.000000e+00> : vector<8x8xf32>
    %64 = tpu.matmul %61, %63, %cst_57 {dimension_numbers = #tpu.dot_dimension_numbers<[1], [1], [0], [0], [0, 0, 1, 0], [], []>} : vector<8x8xbf16>, vector<8x8xbf16>, vector<8x8xf32> -> vector<8x8xf32>
    %cst_58 = arith.constant dense<0xFF800000> : vector<8xf32>
    %65 = vector.multi_reduction <maximumf>, %64, %cst_58 [1] : vector<8x8xf32> to vector<8xf32>
    %66 = vector.shape_cast %65 : vector<8xf32> to vector<8x1xf32>
    %67 = vector.broadcast %66 : vector<8x1xf32> to vector<8x8xf32>
    %68 = arith.subf %64, %67 : vector<8x8xf32>
    %69 = math.exp %68 : vector<8x8xf32>
    %cst_59 = arith.constant dense<0.000000e+00> : vector<8xf32>
    %70 = vector.multi_reduction <add>, %69, %cst_59 [1] : vector<8x8xf32> to vector<8xf32>
    %71 = vector.shape_cast %70 : vector<8xf32> to vector<8x1xf32>
    %72 = tpu.reciprocal %71 {approx = true} : vector<8x1xf32> -> vector<8x1xf32>
    %73 = vector.broadcast %72 : vector<8x1xf32> to vector<8x8xf32>
    %74 = arith.mulf %69, %73 : vector<8x8xf32>
    %75 = arith.truncf %74 : vector<8x8xf32> to vector<8x8xbf16>
    %c0_60 = arith.constant 0 : index
    %c0_61 = arith.constant 0 : index
    %c0_62 = arith.constant 0 : index
    %c24_63 = arith.constant 24 : index
    %76 = vector.load %arg4[%c0_60, %c0_61, %c0_62, %c24_63] : memref<1x1x8x32xbf16, #tpu.memory_space<vmem>>, vector<1x1x8x8xbf16>
    %77 = vector.shape_cast %76 : vector<1x1x8x8xbf16> to vector<8x8xbf16>
    %cst_64 = arith.constant dense<0.000000e+00> : vector<8x8xf32>
    %78 = tpu.matmul %75, %77, %cst_64 {dimension_numbers = #tpu.dot_dimension_numbers<[1], [0], [0], [1], [0, 0, 1, 1], [], []>} : vector<8x8xbf16>, vector<8x8xbf16>, vector<8x8xf32> -> vector<8x8xf32>
    %c0_65 = arith.constant 0 : index
    %c24_66 = arith.constant 24 : index
    %79 = vector.load %arg6[%c0_65, %c24_66] : memref<8x32xf32, #tpu.memory_space<vmem>>, vector<8x8xf32>
    tpu.vector_store %arg6[%c0_65, %c24_66], %78 {strides = array<i32>} : memref<8x32xf32, #tpu.memory_space<vmem>>, vector<8x8xf32>,
    %c0_67 = arith.constant 0 : index
    %c0_68 = arith.constant 0 : index
    %80 = vector.load %arg6[%c0_67, %c0_68] : memref<8x32xf32, #tpu.memory_space<vmem>>, vector<8x32xf32>
    %81 = arith.truncf %80 : vector<8x32xf32> to vector<8x32xbf16>
    %c0_69 = arith.constant 0 : index
    %c0_70 = arith.constant 0 : index
    %c0_71 = arith.constant 0 : index
    %82 = vector.load %arg5[%c0_69, %c0_70, %c0_71] : memref<1x8x32xbf16, #tpu.memory_space<vmem>>, vector<1x8x32xbf16>
    %83 = vector.shape_cast %82 : vector<1x8x32xbf16> to vector<8x32xbf16>
    %84 = vector.shape_cast %81 : vector<8x32xbf16> to vector<1x8x32xbf16>
    tpu.vector_store %arg5[%c0_69, %c0_70, %c0_71], %84 {strides = array<i32>} : memref<1x8x32xbf16, #tpu.memory_space<vmem>>, vector<1x8x32xbf16>,
    return
  }
  func.func @transform_0(%arg0: i32, %arg1: i32) -> (i32, i32, i32, i32) {
    %c0_i32 = arith.constant 0 : i32
    %c0_i32_0 = arith.constant 0 : i32
    %c0_i32_1 = arith.constant 0 : i32
    return %c0_i32, %arg0, %arg1, %c0_i32_0 : i32, i32, i32, i32
  }
  func.func @transform_1(%arg0: i32, %arg1: i32) -> (i32, i32, i32, i32) {
    %c1_i32 = arith.constant 1 : i32
    %c0_i32 = arith.constant 0 : i32
    %c0_i32_0 = arith.constant 0 : i32
    %c0_i32_1 = arith.constant 0 : i32
    return %c1_i32, %arg0, %c0_i32, %c0_i32_0 : i32, i32, i32, i32
  }
  func.func @transform_2(%arg0: i32, %arg1: i32) -> (i32, i32, i32, i32) {
    %c2_i32 = arith.constant 2 : i32
    %c0_i32 = arith.constant 0 : i32
    %c0_i32_0 = arith.constant 0 : i32
    %c0_i32_1 = arith.constant 0 : i32
    return %c2_i32, %arg0, %c0_i32, %c0_i32_0 : i32, i32, i32, i32
  }
  func.func @transform_3(%arg0: i32, %arg1: i32) -> (i32, i32, i32) {
    %c0_i32 = arith.constant 0 : i32
    %c0_i32_0 = arith.constant 0 : i32
    return %arg0, %arg1, %c0_i32 : i32, i32, i32
  }
}

module attributes {stable_mosaic.version = 11 : i64} {
  func.func @_qkv_kernel(%arg0: i32, %arg1: i32, %arg2: i32, %arg3: memref<8x32xbf16, #tpu.memory_space<vmem>>, %arg4: memref<8x32xbf16, #tpu.memory_space<vmem>>, %arg5: memref<3x32x32xbf16, #tpu.memory_space<vmem>>, %arg6: memref<3x1x32xf32, #tpu.memory_space<vmem>>, %arg7: memref<3x8x32xbf16, #tpu.memory_space<vmem>>, %arg8: memref<3x8x32xf32, #tpu.memory_space<vmem>>) attributes {dimension_semantics = [#tpu.dimension_semantics<parallel>, #tpu.dimension_semantics<parallel>, #tpu.dimension_semantics<arbitrary>], iteration_bounds = array<i64: 2, 1, 1>, scalar_prefetch = 0 : i64, scratch_operands = 1 : i64, tpu.core_type = #tpu.core_type<tc>, window_params = [{transform_indices = @transform_0, window_bounds = array<i64: 8, 32>}, {transform_indices = @transform_1, window_bounds = array<i64: 8, 32>}, {transform_indices = @transform_2, window_bounds = array<i64: 3, 32, 32>}, {transform_indices = @transform_3, window_bounds = array<i64: 3, 1, 32>}, {transform_indices = @transform_4, window_bounds = array<i64: 3, 8, 32>}]} {
    %c0_i32 = arith.constant 0 : i32
    %0 = arith.cmpi eq, %arg2, %c0_i32 : i32
    %1 = arith.extui %0 : i1 to i32
    %c0_i32_0 = arith.constant 0 : i32
    %2 = arith.cmpi ne, %1, %c0_i32_0 : i32
    scf.if %2 {
      %cst_33 = arith.constant 0.000000e+00 : f32
      %39 = vector.broadcast %cst_33 : f32 to vector<3x8x32xf32>
      %c0_34 = arith.constant 0 : index
      %c0_35 = arith.constant 0 : index
      %c0_36 = arith.constant 0 : index
      %40 = vector.load %arg8[%c0_34, %c0_35, %c0_36] : memref<3x8x32xf32, #tpu.memory_space<vmem>>, vector<3x8x32xf32>
      tpu.vector_store %arg8[%c0_34, %c0_35, %c0_36], %39 {strides = array<i32>} : memref<3x8x32xf32, #tpu.memory_space<vmem>>, vector<3x8x32xf32>,
    } else {
    }
    %c0 = arith.constant 0 : index
    %c0_1 = arith.constant 0 : index
    %3 = vector.load %arg3[%c0, %c0_1] : memref<8x32xbf16, #tpu.memory_space<vmem>>, vector<8x32xbf16>
    %4 = arith.extf %3 : vector<8x32xbf16> to vector<8x32xf32>
    %c0_2 = arith.constant 0 : index
    %c0_3 = arith.constant 0 : index
    %5 = vector.load %arg4[%c0_2, %c0_3] : memref<8x32xbf16, #tpu.memory_space<vmem>>, vector<8x32xbf16>
    %6 = arith.extf %5 : vector<8x32xbf16> to vector<8x32xf32>
    %7 = arith.addf %4, %6 : vector<8x32xf32>
    %8 = arith.truncf %7 : vector<8x32xf32> to vector<8x32xbf16>
    %c0_4 = arith.constant 0 : index
    %c0_5 = arith.constant 0 : index
    %c0_6 = arith.constant 0 : index
    %9 = vector.load %arg8[%c0_4, %c0_5, %c0_6] : memref<3x8x32xf32, #tpu.memory_space<vmem>>, vector<1x8x32xf32>
    %10 = vector.shape_cast %9 : vector<1x8x32xf32> to vector<8x32xf32>
    %c0_7 = arith.constant 0 : index
    %c0_8 = arith.constant 0 : index
    %c0_9 = arith.constant 0 : index
    %11 = vector.load %arg5[%c0_7, %c0_8, %c0_9] : memref<3x32x32xbf16, #tpu.memory_space<vmem>>, vector<1x32x32xbf16>
    %12 = vector.shape_cast %11 : vector<1x32x32xbf16> to vector<32x32xbf16>
    %cst = arith.constant dense<0.000000e+00> : vector<8x32xf32>
    %13 = tpu.matmul %8, %12, %cst {dimension_numbers = #tpu.dot_dimension_numbers<[1], [0], [0], [1], [0, 0, 1, 1], [], []>} : vector<8x32xbf16>, vector<32x32xbf16>, vector<8x32xf32> -> vector<8x32xf32>
    %14 = arith.addf %10, %13 : vector<8x32xf32>
    %c0_10 = arith.constant 0 : index
    %c0_11 = arith.constant 0 : index
    %c0_12 = arith.constant 0 : index
    %15 = vector.load %arg8[%c0_10, %c0_11, %c0_12] : memref<3x8x32xf32, #tpu.memory_space<vmem>>, vector<1x8x32xf32>
    %16 = vector.shape_cast %15 : vector<1x8x32xf32> to vector<8x32xf32>
    %17 = vector.shape_cast %14 : vector<8x32xf32> to vector<1x8x32xf32>
    tpu.vector_store %arg8[%c0_10, %c0_11, %c0_12], %17 {strides = array<i32>} : memref<3x8x32xf32, #tpu.memory_space<vmem>>, vector<1x8x32xf32>,
    %c1 = arith.constant 1 : index
    %c0_13 = arith.constant 0 : index
    %c0_14 = arith.constant 0 : index
    %18 = vector.load %arg8[%c1, %c0_13, %c0_14] : memref<3x8x32xf32, #tpu.memory_space<vmem>>, vector<1x8x32xf32>
    %19 = vector.shape_cast %18 : vector<1x8x32xf32> to vector<8x32xf32>
    %c1_15 = arith.constant 1 : index
    %c0_16 = arith.constant 0 : index
    %c0_17 = arith.constant 0 : index
    %20 = vector.load %arg5[%c1_15, %c0_16, %c0_17] : memref<3x32x32xbf16, #tpu.memory_space<vmem>>, vector<1x32x32xbf16>
    %21 = vector.shape_cast %20 : vector<1x32x32xbf16> to vector<32x32xbf16>
    %cst_18 = arith.constant dense<0.000000e+00> : vector<8x32xf32>
    %22 = tpu.matmul %8, %21, %cst_18 {dimension_numbers = #tpu.dot_dimension_numbers<[1], [0], [0], [1], [0, 0, 1, 1], [], []>} : vector<8x32xbf16>, vector<32x32xbf16>, vector<8x32xf32> -> vector<8x32xf32>
    %23 = arith.addf %19, %22 : vector<8x32xf32>
    %c1_19 = arith.constant 1 : index
    %c0_20 = arith.constant 0 : index
    %c0_21 = arith.constant 0 : index
    %24 = vector.load %arg8[%c1_19, %c0_20, %c0_21] : memref<3x8x32xf32, #tpu.memory_space<vmem>>, vector<1x8x32xf32>
    %25 = vector.shape_cast %24 : vector<1x8x32xf32> to vector<8x32xf32>
    %26 = vector.shape_cast %23 : vector<8x32xf32> to vector<1x8x32xf32>
    tpu.vector_store %arg8[%c1_19, %c0_20, %c0_21], %26 {strides = array<i32>} : memref<3x8x32xf32, #tpu.memory_space<vmem>>, vector<1x8x32xf32>,
    %c2 = arith.constant 2 : index
    %c0_22 = arith.constant 0 : index
    %c0_23 = arith.constant 0 : index
    %27 = vector.load %arg8[%c2, %c0_22, %c0_23] : memref<3x8x32xf32, #tpu.memory_space<vmem>>, vector<1x8x32xf32>
    %28 = vector.shape_cast %27 : vector<1x8x32xf32> to vector<8x32xf32>
    %c2_24 = arith.constant 2 : index
    %c0_25 = arith.constant 0 : index
    %c0_26 = arith.constant 0 : index
    %29 = vector.load %arg5[%c2_24, %c0_25, %c0_26] : memref<3x32x32xbf16, #tpu.memory_space<vmem>>, vector<1x32x32xbf16>
    %30 = vector.shape_cast %29 : vector<1x32x32xbf16> to vector<32x32xbf16>
    %cst_27 = arith.constant dense<0.000000e+00> : vector<8x32xf32>
    %31 = tpu.matmul %3, %30, %cst_27 {dimension_numbers = #tpu.dot_dimension_numbers<[1], [0], [0], [1], [0, 0, 1, 1], [], []>} : vector<8x32xbf16>, vector<32x32xbf16>, vector<8x32xf32> -> vector<8x32xf32>
    %32 = arith.addf %28, %31 : vector<8x32xf32>
    %c2_28 = arith.constant 2 : index
    %c0_29 = arith.constant 0 : index
    %c0_30 = arith.constant 0 : index
    %33 = vector.load %arg8[%c2_28, %c0_29, %c0_30] : memref<3x8x32xf32, #tpu.memory_space<vmem>>, vector<1x8x32xf32>
    %34 = vector.shape_cast %33 : vector<1x8x32xf32> to vector<8x32xf32>
    %35 = vector.shape_cast %32 : vector<8x32xf32> to vector<1x8x32xf32>
    tpu.vector_store %arg8[%c2_28, %c0_29, %c0_30], %35 {strides = array<i32>} : memref<3x8x32xf32, #tpu.memory_space<vmem>>, vector<1x8x32xf32>,
    %c0_i32_31 = arith.constant 0 : i32
    %36 = arith.cmpi eq, %arg2, %c0_i32_31 : i32
    %37 = arith.extui %36 : i1 to i32
    %c0_i32_32 = arith.constant 0 : i32
    %38 = arith.cmpi ne, %37, %c0_i32_32 : i32
    scf.if %38 {
      %c0_33 = arith.constant 0 : index
      %c0_34 = arith.constant 0 : index
      %c0_35 = arith.constant 0 : index
      %39 = vector.load %arg8[%c0_33, %c0_34, %c0_35] : memref<3x8x32xf32, #tpu.memory_space<vmem>>, vector<1x8x32xf32>
      %40 = vector.shape_cast %39 : vector<1x8x32xf32> to vector<8x32xf32>
      %c0_36 = arith.constant 0 : index
      %c0_37 = arith.constant 0 : index
      %c0_38 = arith.constant 0 : index
      %41 = vector.load %arg6[%c0_36, %c0_37, %c0_38] : memref<3x1x32xf32, #tpu.memory_space<vmem>>, vector<1x1x32xf32>
      %42 = vector.shape_cast %41 : vector<1x1x32xf32> to vector<1x32xf32>
      %43 = vector.broadcast %42 : vector<1x32xf32> to vector<8x32xf32>
      %44 = arith.addf %40, %43 : vector<8x32xf32>
      %45 = arith.truncf %44 : vector<8x32xf32> to vector<8x32xbf16>
      %c0_39 = arith.constant 0 : index
      %c0_40 = arith.constant 0 : index
      %c0_41 = arith.constant 0 : index
      %46 = vector.load %arg7[%c0_39, %c0_40, %c0_41] : memref<3x8x32xbf16, #tpu.memory_space<vmem>>, vector<1x8x32xbf16>
      %47 = vector.shape_cast %46 : vector<1x8x32xbf16> to vector<8x32xbf16>
      %48 = vector.shape_cast %45 : vector<8x32xbf16> to vector<1x8x32xbf16>
      tpu.vector_store %arg7[%c0_39, %c0_40, %c0_41], %48 {strides = array<i32>} : memref<3x8x32xbf16, #tpu.memory_space<vmem>>, vector<1x8x32xbf16>,
      %c1_42 = arith.constant 1 : index
      %c0_43 = arith.constant 0 : index
      %c0_44 = arith.constant 0 : index
      %49 = vector.load %arg8[%c1_42, %c0_43, %c0_44] : memref<3x8x32xf32, #tpu.memory_space<vmem>>, vector<1x8x32xf32>
      %50 = vector.shape_cast %49 : vector<1x8x32xf32> to vector<8x32xf32>
      %c1_45 = arith.constant 1 : index
      %c0_46 = arith.constant 0 : index
      %c0_47 = arith.constant 0 : index
      %51 = vector.load %arg6[%c1_45, %c0_46, %c0_47] : memref<3x1x32xf32, #tpu.memory_space<vmem>>, vector<1x1x32xf32>
      %52 = vector.shape_cast %51 : vector<1x1x32xf32> to vector<1x32xf32>
      %53 = vector.broadcast %52 : vector<1x32xf32> to vector<8x32xf32>
      %54 = arith.addf %50, %53 : vector<8x32xf32>
      %55 = arith.truncf %54 : vector<8x32xf32> to vector<8x32xbf16>
      %c1_48 = arith.constant 1 : index
      %c0_49 = arith.constant 0 : index
      %c0_50 = arith.constant 0 : index
      %56 = vector.load %arg7[%c1_48, %c0_49, %c0_50] : memref<3x8x32xbf16, #tpu.memory_space<vmem>>, vector<1x8x32xbf16>
      %57 = vector.shape_cast %56 : vector<1x8x32xbf16> to vector<8x32xbf16>
      %58 = vector.shape_cast %55 : vector<8x32xbf16> to vector<1x8x32xbf16>
      tpu.vector_store %arg7[%c1_48, %c0_49, %c0_50], %58 {strides = array<i32>} : memref<3x8x32xbf16, #tpu.memory_space<vmem>>, vector<1x8x32xbf16>,
      %c2_51 = arith.constant 2 : index
      %c0_52 = arith.constant 0 : index
      %c0_53 = arith.constant 0 : index
      %59 = vector.load %arg8[%c2_51, %c0_52, %c0_53] : memref<3x8x32xf32, #tpu.memory_space<vmem>>, vector<1x8x32xf32>
      %60 = vector.shape_cast %59 : vector<1x8x32xf32> to vector<8x32xf32>
      %c2_54 = arith.constant 2 : index
      %c0_55 = arith.constant 0 : index
      %c0_56 = arith.constant 0 : index
      %61 = vector.load %arg6[%c2_54, %c0_55, %c0_56] : memref<3x1x32xf32, #tpu.memory_space<vmem>>, vector<1x1x32xf32>
      %62 = vector.shape_cast %61 : vector<1x1x32xf32> to vector<1x32xf32>
      %63 = vector.broadcast %62 : vector<1x32xf32> to vector<8x32xf32>
      %64 = arith.addf %60, %63 : vector<8x32xf32>
      %65 = arith.truncf %64 : vector<8x32xf32> to vector<8x32xbf16>
      %c2_57 = arith.constant 2 : index
      %c0_58 = arith.constant 0 : index
      %c0_59 = arith.constant 0 : index
      %66 = vector.load %arg7[%c2_57, %c0_58, %c0_59] : memref<3x8x32xbf16, #tpu.memory_space<vmem>>, vector<1x8x32xbf16>
      %67 = vector.shape_cast %66 : vector<1x8x32xbf16> to vector<8x32xbf16>
      %68 = vector.shape_cast %65 : vector<8x32xbf16> to vector<1x8x32xbf16>
      tpu.vector_store %arg7[%c2_57, %c0_58, %c0_59], %68 {strides = array<i32>} : memref<3x8x32xbf16, #tpu.memory_space<vmem>>, vector<1x8x32xbf16>,
    } else {
    }
    return
  }
  func.func @transform_0(%arg0: i32, %arg1: i32, %arg2: i32) -> (i32, i32) {
    %c0_i32 = arith.constant 0 : i32
    return %arg0, %arg2 : i32, i32
  }
  func.func @transform_1(%arg0: i32, %arg1: i32, %arg2: i32) -> (i32, i32) {
    %c0_i32 = arith.constant 0 : i32
    return %arg0, %arg2 : i32, i32
  }
  func.func @transform_2(%arg0: i32, %arg1: i32, %arg2: i32) -> (i32, i32, i32) {
    %c0_i32 = arith.constant 0 : i32
    %c0_i32_0 = arith.constant 0 : i32
    return %c0_i32, %arg2, %arg1 : i32, i32, i32
  }
  func.func @transform_3(%arg0: i32, %arg1: i32, %arg2: i32) -> (i32, i32, i32) {
    %c0_i32 = arith.constant 0 : i32
    %c0_i32_0 = arith.constant 0 : i32
    %c0_i32_1 = arith.constant 0 : i32
    return %c0_i32, %c0_i32_0, %arg1 : i32, i32, i32
  }
  func.func @transform_4(%arg0: i32, %arg1: i32, %arg2: i32) -> (i32, i32, i32) {
    %c0_i32 = arith.constant 0 : i32
    %c0_i32_0 = arith.constant 0 : i32
    return %c0_i32, %arg0, %arg1 : i32, i32, i32
  }
}

module attributes {stable_mosaic.version = 11 : i64} {
  func.func @_linear_res_ln_kernel(%arg0: i32, %arg1: i32, %arg2: memref<8x32xbf16, #tpu.memory_space<vmem>>, %arg3: memref<32x32xbf16, #tpu.memory_space<vmem>>, %arg4: memref<1x32xf32, #tpu.memory_space<vmem>>, %arg5: memref<8x32xbf16, #tpu.memory_space<vmem>>, %arg6: memref<1x32xf32, #tpu.memory_space<vmem>>, %arg7: memref<1x32xf32, #tpu.memory_space<vmem>>, %arg8: memref<8x32xbf16, #tpu.memory_space<vmem>>, %arg9: memref<8x32xf32, #tpu.memory_space<vmem>>) attributes {dimension_semantics = [#tpu.dimension_semantics<parallel>, #tpu.dimension_semantics<arbitrary>], iteration_bounds = array<i64: 2, 1>, scalar_prefetch = 0 : i64, scratch_operands = 1 : i64, tpu.core_type = #tpu.core_type<tc>, window_params = [{transform_indices = @transform_0, window_bounds = array<i64: 8, 32>}, {transform_indices = @transform_1, window_bounds = array<i64: 32, 32>}, {pipeline_mode = #tpu.pipeline_mode<synchronous>, transform_indices = @transform_2, window_bounds = array<i64: 1, 32>}, {transform_indices = @transform_3, window_bounds = array<i64: 8, 32>}, {pipeline_mode = #tpu.pipeline_mode<synchronous>, transform_indices = @transform_4, window_bounds = array<i64: 1, 32>}, {pipeline_mode = #tpu.pipeline_mode<synchronous>, transform_indices = @transform_5, window_bounds = array<i64: 1, 32>}, {transform_indices = @transform_6, window_bounds = array<i64: 8, 32>}]} {
    %c0_i32 = arith.constant 0 : i32
    %0 = arith.cmpi eq, %arg1, %c0_i32 : i32
    %1 = arith.extui %0 : i1 to i32
    %c0_i32_0 = arith.constant 0 : i32
    %2 = arith.cmpi ne, %1, %c0_i32_0 : i32
    scf.if %2 {
      %cst_10 = arith.constant 0.000000e+00 : f32
      %12 = vector.broadcast %cst_10 : f32 to vector<8x32xf32>
      %c0_11 = arith.constant 0 : index
      %c0_12 = arith.constant 0 : index
      %13 = vector.load %arg9[%c0_11, %c0_12] : memref<8x32xf32, #tpu.memory_space<vmem>>, vector<8x32xf32>
      tpu.vector_store %arg9[%c0_11, %c0_12], %12 {strides = array<i32>} : memref<8x32xf32, #tpu.memory_space<vmem>>, vector<8x32xf32>,
    } else {
    }
    %c0 = arith.constant 0 : index
    %c0_1 = arith.constant 0 : index
    %3 = vector.load %arg9[%c0, %c0_1] : memref<8x32xf32, #tpu.memory_space<vmem>>, vector<8x32xf32>
    %c0_2 = arith.constant 0 : index
    %c0_3 = arith.constant 0 : index
    %4 = vector.load %arg2[%c0_2, %c0_3] : memref<8x32xbf16, #tpu.memory_space<vmem>>, vector<8x32xbf16>
    %c0_4 = arith.constant 0 : index
    %c0_5 = arith.constant 0 : index
    %5 = vector.load %arg3[%c0_4, %c0_5] : memref<32x32xbf16, #tpu.memory_space<vmem>>, vector<32x32xbf16>
    %cst = arith.constant dense<0.000000e+00> : vector<8x32xf32>
    %6 = tpu.matmul %4, %5, %cst {dimension_numbers = #tpu.dot_dimension_numbers<[1], [0], [0], [1], [0, 0, 1, 1], [], []>} : vector<8x32xbf16>, vector<32x32xbf16>, vector<8x32xf32> -> vector<8x32xf32>
    %7 = arith.addf %3, %6 : vector<8x32xf32>
    %c0_6 = arith.constant 0 : index
    %c0_7 = arith.constant 0 : index
    %8 = vector.load %arg9[%c0_6, %c0_7] : memref<8x32xf32, #tpu.memory_space<vmem>>, vector<8x32xf32>
    tpu.vector_store %arg9[%c0_6, %c0_7], %7 {strides = array<i32>} : memref<8x32xf32, #tpu.memory_space<vmem>>, vector<8x32xf32>,
    %c0_i32_8 = arith.constant 0 : i32
    %9 = arith.cmpi eq, %arg1, %c0_i32_8 : i32
    %10 = arith.extui %9 : i1 to i32
    %c0_i32_9 = arith.constant 0 : i32
    %11 = arith.cmpi ne, %10, %c0_i32_9 : i32
    scf.if %11 {
      %c0_10 = arith.constant 0 : index
      %c0_11 = arith.constant 0 : index
      %12 = vector.load %arg9[%c0_10, %c0_11] : memref<8x32xf32, #tpu.memory_space<vmem>>, vector<8x32xf32>
      %c0_12 = arith.constant 0 : index
      %c0_13 = arith.constant 0 : index
      %13 = vector.load %arg4[%c0_12, %c0_13] : memref<1x32xf32, #tpu.memory_space<vmem>>, vector<1x32xf32>
      %14 = vector.broadcast %13 : vector<1x32xf32> to vector<8x32xf32>
      %15 = arith.addf %12, %14 : vector<8x32xf32>
      %c0_14 = arith.constant 0 : index
      %c0_15 = arith.constant 0 : index
      %16 = vector.load %arg5[%c0_14, %c0_15] : memref<8x32xbf16, #tpu.memory_space<vmem>>, vector<8x32xbf16>
      %17 = arith.extf %16 : vector<8x32xbf16> to vector<8x32xf32>
      %18 = arith.addf %15, %17 : vector<8x32xf32>
      %cst_16 = arith.constant dense<0.000000e+00> : vector<8xf32>
      %19 = vector.multi_reduction <add>, %18, %cst_16 [1] : vector<8x32xf32> to vector<8xf32>
      %20 = vector.shape_cast %19 : vector<8xf32> to vector<8x1xf32>
      %cst_17 = arith.constant 3.200000e+01 : f32
      %21 = vector.broadcast %cst_17 : f32 to vector<8x1xf32>
      %22 = arith.divf %20, %21 : vector<8x1xf32>
      %23 = vector.broadcast %22 : vector<8x1xf32> to vector<8x32xf32>
      %24 = arith.subf %18, %23 : vector<8x32xf32>
      %25 = arith.mulf %24, %24 : vector<8x32xf32>
      %cst_18 = arith.constant dense<0.000000e+00> : vector<8xf32>
      %26 = vector.multi_reduction <add>, %25, %cst_18 [1] : vector<8x32xf32> to vector<8xf32>
      %27 = vector.shape_cast %26 : vector<8xf32> to vector<8x1xf32>
      %cst_19 = arith.constant 3.200000e+01 : f32
      %28 = vector.broadcast %cst_19 : f32 to vector<8x1xf32>
      %29 = arith.divf %27, %28 : vector<8x1xf32>
      %30 = vector.broadcast %22 : vector<8x1xf32> to vector<8x32xf32>
      %31 = arith.subf %18, %30 : vector<8x32xf32>
      %cst_20 = arith.constant 9.99999974E-6 : f32
      %32 = vector.broadcast %cst_20 : f32 to vector<8x1xf32>
      %33 = arith.addf %29, %32 : vector<8x1xf32>
      %34 = math.rsqrt %33 : vector<8x1xf32>
      %35 = vector.broadcast %34 : vector<8x1xf32> to vector<8x32xf32>
      %36 = arith.mulf %31, %35 : vector<8x32xf32>
      %c0_21 = arith.constant 0 : index
      %c0_22 = arith.constant 0 : index
      %37 = vector.load %arg6[%c0_21, %c0_22] : memref<1x32xf32, #tpu.memory_space<vmem>>, vector<1x32xf32>
      %38 = vector.broadcast %37 : vector<1x32xf32> to vector<8x32xf32>
      %39 = arith.mulf %36, %38 : vector<8x32xf32>
      %c0_23 = arith.constant 0 : index
      %c0_24 = arith.constant 0 : index
      %40 = vector.load %arg7[%c0_23, %c0_24] : memref<1x32xf32, #tpu.memory_space<vmem>>, vector<1x32xf32>
      %41 = vector.broadcast %40 : vector<1x32xf32> to vector<8x32xf32>
      %42 = arith.addf %39, %41 : vector<8x32xf32>
      %43 = arith.truncf %42 : vector<8x32xf32> to vector<8x32xbf16>
      %c0_25 = arith.constant 0 : index
      %c0_26 = arith.constant 0 : index
      %44 = vector.load %arg8[%c0_25, %c0_26] : memref<8x32xbf16, #tpu.memory_space<vmem>>, vector<8x32xbf16>
      tpu.vector_store %arg8[%c0_25, %c0_26], %43 {strides = array<i32>} : memref<8x32xbf16, #tpu.memory_space<vmem>>, vector<8x32xbf16>,
    } else {
    }
    return
  }
  func.func @transform_0(%arg0: i32, %arg1: i32) -> (i32, i32) {
    %c0_i32 = arith.constant 0 : i32
    return %arg0, %arg1 : i32, i32
  }
  func.func @transform_1(%arg0: i32, %arg1: i32) -> (i32, i32) {
    %c0_i32 = arith.constant 0 : i32
    %c0_i32_0 = arith.constant 0 : i32
    return %arg1, %c0_i32 : i32, i32
  }
  func.func @transform_2(%arg0: i32, %arg1: i32) -> (i32, i32) {
    %c0_i32 = arith.constant 0 : i32
    %c0_i32_0 = arith.constant 0 : i32
    %c0_i32_1 = arith.constant 0 : i32
    return %c0_i32, %c0_i32_0 : i32, i32
  }
  func.func @transform_3(%arg0: i32, %arg1: i32) -> (i32, i32) {
    %c0_i32 = arith.constant 0 : i32
    %c0_i32_0 = arith.constant 0 : i32
    return %arg0, %c0_i32 : i32, i32
  }
  func.func @transform_4(%arg0: i32, %arg1: i32) -> (i32, i32) {
    %c0_i32 = arith.constant 0 : i32
    %c0_i32_0 = arith.constant 0 : i32
    %c0_i32_1 = arith.constant 0 : i32
    return %c0_i32, %c0_i32_0 : i32, i32
  }
  func.func @transform_5(%arg0: i32, %arg1: i32) -> (i32, i32) {
    %c0_i32 = arith.constant 0 : i32
    %c0_i32_0 = arith.constant 0 : i32
    %c0_i32_1 = arith.constant 0 : i32
    return %c0_i32, %c0_i32_0 : i32, i32
  }
  func.func @transform_6(%arg0: i32, %arg1: i32) -> (i32, i32) {
    %c0_i32 = arith.constant 0 : i32
    %c0_i32_0 = arith.constant 0 : i32
    return %arg0, %c0_i32 : i32, i32
  }
}

module attributes {stable_mosaic.version = 11 : i64} {
  func.func @_linear_kernel(%arg0: i32, %arg1: i32, %arg2: i32, %arg3: memref<8x32xbf16, #tpu.memory_space<vmem>>, %arg4: memref<32x64xbf16, #tpu.memory_space<vmem>>, %arg5: memref<1x64xf32, #tpu.memory_space<vmem>>, %arg6: memref<8x64xbf16, #tpu.memory_space<vmem>>, %arg7: memref<8x64xf32, #tpu.memory_space<vmem>>) attributes {dimension_semantics = [#tpu.dimension_semantics<parallel>, #tpu.dimension_semantics<parallel>, #tpu.dimension_semantics<arbitrary>], iteration_bounds = array<i64: 2, 1, 1>, scalar_prefetch = 0 : i64, scratch_operands = 1 : i64, tpu.core_type = #tpu.core_type<tc>, window_params = [{transform_indices = @transform_0, window_bounds = array<i64: 8, 32>}, {transform_indices = @transform_1, window_bounds = array<i64: 32, 64>}, {transform_indices = @transform_2, window_bounds = array<i64: 1, 64>}, {transform_indices = @transform_3, window_bounds = array<i64: 8, 64>}]} {
    %c0_i32 = arith.constant 0 : i32
    %0 = arith.cmpi eq, %arg2, %c0_i32 : i32
    %1 = arith.extui %0 : i1 to i32
    %c0_i32_0 = arith.constant 0 : i32
    %2 = arith.cmpi ne, %1, %c0_i32_0 : i32
    scf.if %2 {
      %cst_10 = arith.constant 0.000000e+00 : f32
      %12 = vector.broadcast %cst_10 : f32 to vector<8x64xf32>
      %c0_11 = arith.constant 0 : index
      %c0_12 = arith.constant 0 : index
      %13 = vector.load %arg7[%c0_11, %c0_12] : memref<8x64xf32, #tpu.memory_space<vmem>>, vector<8x64xf32>
      tpu.vector_store %arg7[%c0_11, %c0_12], %12 {strides = array<i32>} : memref<8x64xf32, #tpu.memory_space<vmem>>, vector<8x64xf32>,
    } else {
    }
    %c0 = arith.constant 0 : index
    %c0_1 = arith.constant 0 : index
    %3 = vector.load %arg7[%c0, %c0_1] : memref<8x64xf32, #tpu.memory_space<vmem>>, vector<8x64xf32>
    %c0_2 = arith.constant 0 : index
    %c0_3 = arith.constant 0 : index
    %4 = vector.load %arg3[%c0_2, %c0_3] : memref<8x32xbf16, #tpu.memory_space<vmem>>, vector<8x32xbf16>
    %c0_4 = arith.constant 0 : index
    %c0_5 = arith.constant 0 : index
    %5 = vector.load %arg4[%c0_4, %c0_5] : memref<32x64xbf16, #tpu.memory_space<vmem>>, vector<32x64xbf16>
    %cst = arith.constant dense<0.000000e+00> : vector<8x64xf32>
    %6 = tpu.matmul %4, %5, %cst {dimension_numbers = #tpu.dot_dimension_numbers<[1], [0], [0], [1], [0, 0, 1, 1], [], []>} : vector<8x32xbf16>, vector<32x64xbf16>, vector<8x64xf32> -> vector<8x64xf32>
    %7 = arith.addf %3, %6 : vector<8x64xf32>
    %c0_6 = arith.constant 0 : index
    %c0_7 = arith.constant 0 : index
    %8 = vector.load %arg7[%c0_6, %c0_7] : memref<8x64xf32, #tpu.memory_space<vmem>>, vector<8x64xf32>
    tpu.vector_store %arg7[%c0_6, %c0_7], %7 {strides = array<i32>} : memref<8x64xf32, #tpu.memory_space<vmem>>, vector<8x64xf32>,
    %c0_i32_8 = arith.constant 0 : i32
    %9 = arith.cmpi eq, %arg2, %c0_i32_8 : i32
    %10 = arith.extui %9 : i1 to i32
    %c0_i32_9 = arith.constant 0 : i32
    %11 = arith.cmpi ne, %10, %c0_i32_9 : i32
    scf.if %11 {
      %c0_10 = arith.constant 0 : index
      %c0_11 = arith.constant 0 : index
      %12 = vector.load %arg7[%c0_10, %c0_11] : memref<8x64xf32, #tpu.memory_space<vmem>>, vector<8x64xf32>
      %c0_12 = arith.constant 0 : index
      %c0_13 = arith.constant 0 : index
      %13 = vector.load %arg5[%c0_12, %c0_13] : memref<1x64xf32, #tpu.memory_space<vmem>>, vector<1x64xf32>
      %14 = vector.broadcast %13 : vector<1x64xf32> to vector<8x64xf32>
      %15 = arith.addf %12, %14 : vector<8x64xf32>
      %cst_14 = arith.constant 0.000000e+00 : f32
      %16 = vector.broadcast %cst_14 : f32 to vector<8x64xf32>
      %17 = arith.maximumf %15, %16 : vector<8x64xf32>
      %18 = arith.truncf %17 : vector<8x64xf32> to vector<8x64xbf16>
      %c0_15 = arith.constant 0 : index
      %c0_16 = arith.constant 0 : index
      %19 = vector.load %arg6[%c0_15, %c0_16] : memref<8x64xbf16, #tpu.memory_space<vmem>>, vector<8x64xbf16>
      tpu.vector_store %arg6[%c0_15, %c0_16], %18 {strides = array<i32>} : memref<8x64xbf16, #tpu.memory_space<vmem>>, vector<8x64xbf16>,
    } else {
    }
    return
  }
  func.func @transform_0(%arg0: i32, %arg1: i32, %arg2: i32) -> (i32, i32) {
    %c0_i32 = arith.constant 0 : i32
    return %arg0, %arg2 : i32, i32
  }
  func.func @transform_1(%arg0: i32, %arg1: i32, %arg2: i32) -> (i32, i32) {
    %c0_i32 = arith.constant 0 : i32
    return %arg2, %arg1 : i32, i32
  }
  func.func @transform_2(%arg0: i32, %arg1: i32, %arg2: i32) -> (i32, i32) {
    %c0_i32 = arith.constant 0 : i32
    %c0_i32_0 = arith.constant 0 : i32
    return %c0_i32, %arg1 : i32, i32
  }
  func.func @transform_3(%arg0: i32, %arg1: i32, %arg2: i32) -> (i32, i32) {
    %c0_i32 = arith.constant 0 : i32
    return %arg0, %arg1 : i32, i32
  }
}

module attributes {stable_mosaic.version = 11 : i64} {
  func.func @_linear_res_ln_kernel(%arg0: i32, %arg1: i32, %arg2: memref<8x64xbf16, #tpu.memory_space<vmem>>, %arg3: memref<64x32xbf16, #tpu.memory_space<vmem>>, %arg4: memref<1x32xf32, #tpu.memory_space<vmem>>, %arg5: memref<8x32xbf16, #tpu.memory_space<vmem>>, %arg6: memref<1x32xf32, #tpu.memory_space<vmem>>, %arg7: memref<1x32xf32, #tpu.memory_space<vmem>>, %arg8: memref<8x32xbf16, #tpu.memory_space<vmem>>, %arg9: memref<8x32xf32, #tpu.memory_space<vmem>>) attributes {dimension_semantics = [#tpu.dimension_semantics<parallel>, #tpu.dimension_semantics<arbitrary>], iteration_bounds = array<i64: 2, 1>, scalar_prefetch = 0 : i64, scratch_operands = 1 : i64, tpu.core_type = #tpu.core_type<tc>, window_params = [{transform_indices = @transform_0, window_bounds = array<i64: 8, 64>}, {transform_indices = @transform_1, window_bounds = array<i64: 64, 32>}, {pipeline_mode = #tpu.pipeline_mode<synchronous>, transform_indices = @transform_2, window_bounds = array<i64: 1, 32>}, {transform_indices = @transform_3, window_bounds = array<i64: 8, 32>}, {pipeline_mode = #tpu.pipeline_mode<synchronous>, transform_indices = @transform_4, window_bounds = array<i64: 1, 32>}, {pipeline_mode = #tpu.pipeline_mode<synchronous>, transform_indices = @transform_5, window_bounds = array<i64: 1, 32>}, {transform_indices = @transform_6, window_bounds = array<i64: 8, 32>}]} {
    %c0_i32 = arith.constant 0 : i32
    %0 = arith.cmpi eq, %arg1, %c0_i32 : i32
    %1 = arith.extui %0 : i1 to i32
    %c0_i32_0 = arith.constant 0 : i32
    %2 = arith.cmpi ne, %1, %c0_i32_0 : i32
    scf.if %2 {
      %cst_10 = arith.constant 0.000000e+00 : f32
      %12 = vector.broadcast %cst_10 : f32 to vector<8x32xf32>
      %c0_11 = arith.constant 0 : index
      %c0_12 = arith.constant 0 : index
      %13 = vector.load %arg9[%c0_11, %c0_12] : memref<8x32xf32, #tpu.memory_space<vmem>>, vector<8x32xf32>
      tpu.vector_store %arg9[%c0_11, %c0_12], %12 {strides = array<i32>} : memref<8x32xf32, #tpu.memory_space<vmem>>, vector<8x32xf32>,
    } else {
    }
    %c0 = arith.constant 0 : index
    %c0_1 = arith.constant 0 : index
    %3 = vector.load %arg9[%c0, %c0_1] : memref<8x32xf32, #tpu.memory_space<vmem>>, vector<8x32xf32>
    %c0_2 = arith.constant 0 : index
    %c0_3 = arith.constant 0 : index
    %4 = vector.load %arg2[%c0_2, %c0_3] : memref<8x64xbf16, #tpu.memory_space<vmem>>, vector<8x64xbf16>
    %c0_4 = arith.constant 0 : index
    %c0_5 = arith.constant 0 : index
    %5 = vector.load %arg3[%c0_4, %c0_5] : memref<64x32xbf16, #tpu.memory_space<vmem>>, vector<64x32xbf16>
    %cst = arith.constant dense<0.000000e+00> : vector<8x32xf32>
    %6 = tpu.matmul %4, %5, %cst {dimension_numbers = #tpu.dot_dimension_numbers<[1], [0], [0], [1], [0, 0, 1, 1], [], []>} : vector<8x64xbf16>, vector<64x32xbf16>, vector<8x32xf32> -> vector<8x32xf32>
    %7 = arith.addf %3, %6 : vector<8x32xf32>
    %c0_6 = arith.constant 0 : index
    %c0_7 = arith.constant 0 : index
    %8 = vector.load %arg9[%c0_6, %c0_7] : memref<8x32xf32, #tpu.memory_space<vmem>>, vector<8x32xf32>
    tpu.vector_store %arg9[%c0_6, %c0_7], %7 {strides = array<i32>} : memref<8x32xf32, #tpu.memory_space<vmem>>, vector<8x32xf32>,
    %c0_i32_8 = arith.constant 0 : i32
    %9 = arith.cmpi eq, %arg1, %c0_i32_8 : i32
    %10 = arith.extui %9 : i1 to i32
    %c0_i32_9 = arith.constant 0 : i32
    %11 = arith.cmpi ne, %10, %c0_i32_9 : i32
    scf.if %11 {
      %c0_10 = arith.constant 0 : index
      %c0_11 = arith.constant 0 : index
      %12 = vector.load %arg9[%c0_10, %c0_11] : memref<8x32xf32, #tpu.memory_space<vmem>>, vector<8x32xf32>
      %c0_12 = arith.constant 0 : index
      %c0_13 = arith.constant 0 : index
      %13 = vector.load %arg4[%c0_12, %c0_13] : memref<1x32xf32, #tpu.memory_space<vmem>>, vector<1x32xf32>
      %14 = vector.broadcast %13 : vector<1x32xf32> to vector<8x32xf32>
      %15 = arith.addf %12, %14 : vector<8x32xf32>
      %c0_14 = arith.constant 0 : index
      %c0_15 = arith.constant 0 : index
      %16 = vector.load %arg5[%c0_14, %c0_15] : memref<8x32xbf16, #tpu.memory_space<vmem>>, vector<8x32xbf16>
      %17 = arith.extf %16 : vector<8x32xbf16> to vector<8x32xf32>
      %18 = arith.addf %15, %17 : vector<8x32xf32>
      %cst_16 = arith.constant dense<0.000000e+00> : vector<8xf32>
      %19 = vector.multi_reduction <add>, %18, %cst_16 [1] : vector<8x32xf32> to vector<8xf32>
      %20 = vector.shape_cast %19 : vector<8xf32> to vector<8x1xf32>
      %cst_17 = arith.constant 3.200000e+01 : f32
      %21 = vector.broadcast %cst_17 : f32 to vector<8x1xf32>
      %22 = arith.divf %20, %21 : vector<8x1xf32>
      %23 = vector.broadcast %22 : vector<8x1xf32> to vector<8x32xf32>
      %24 = arith.subf %18, %23 : vector<8x32xf32>
      %25 = arith.mulf %24, %24 : vector<8x32xf32>
      %cst_18 = arith.constant dense<0.000000e+00> : vector<8xf32>
      %26 = vector.multi_reduction <add>, %25, %cst_18 [1] : vector<8x32xf32> to vector<8xf32>
      %27 = vector.shape_cast %26 : vector<8xf32> to vector<8x1xf32>
      %cst_19 = arith.constant 3.200000e+01 : f32
      %28 = vector.broadcast %cst_19 : f32 to vector<8x1xf32>
      %29 = arith.divf %27, %28 : vector<8x1xf32>
      %30 = vector.broadcast %22 : vector<8x1xf32> to vector<8x32xf32>
      %31 = arith.subf %18, %30 : vector<8x32xf32>
      %cst_20 = arith.constant 9.99999974E-6 : f32
      %32 = vector.broadcast %cst_20 : f32 to vector<8x1xf32>
      %33 = arith.addf %29, %32 : vector<8x1xf32>
      %34 = math.rsqrt %33 : vector<8x1xf32>
      %35 = vector.broadcast %34 : vector<8x1xf32> to vector<8x32xf32>
      %36 = arith.mulf %31, %35 : vector<8x32xf32>
      %c0_21 = arith.constant 0 : index
      %c0_22 = arith.constant 0 : index
      %37 = vector.load %arg6[%c0_21, %c0_22] : memref<1x32xf32, #tpu.memory_space<vmem>>, vector<1x32xf32>
      %38 = vector.broadcast %37 : vector<1x32xf32> to vector<8x32xf32>
      %39 = arith.mulf %36, %38 : vector<8x32xf32>
      %c0_23 = arith.constant 0 : index
      %c0_24 = arith.constant 0 : index
      %40 = vector.load %arg7[%c0_23, %c0_24] : memref<1x32xf32, #tpu.memory_space<vmem>>, vector<1x32xf32>
      %41 = vector.broadcast %40 : vector<1x32xf32> to vector<8x32xf32>
      %42 = arith.addf %39, %41 : vector<8x32xf32>
      %43 = arith.truncf %42 : vector<8x32xf32> to vector<8x32xbf16>
      %c0_25 = arith.constant 0 : index
      %c0_26 = arith.constant 0 : index
      %44 = vector.load %arg8[%c0_25, %c0_26] : memref<8x32xbf16, #tpu.memory_space<vmem>>, vector<8x32xbf16>
      tpu.vector_store %arg8[%c0_25, %c0_26], %43 {strides = array<i32>} : memref<8x32xbf16, #tpu.memory_space<vmem>>, vector<8x32xbf16>,
    } else {
    }
    return
  }
  func.func @transform_0(%arg0: i32, %arg1: i32) -> (i32, i32) {
    %c0_i32 = arith.constant 0 : i32
    return %arg0, %arg1 : i32, i32
  }
  func.func @transform_1(%arg0: i32, %arg1: i32) -> (i32, i32) {
    %c0_i32 = arith.constant 0 : i32
    %c0_i32_0 = arith.constant 0 : i32
    return %arg1, %c0_i32 : i32, i32
  }
  func.func @transform_2(%arg0: i32, %arg1: i32) -> (i32, i32) {
    %c0_i32 = arith.constant 0 : i32
    %c0_i32_0 = arith.constant 0 : i32
    %c0_i32_1 = arith.constant 0 : i32
    return %c0_i32, %c0_i32_0 : i32, i32
  }
  func.func @transform_3(%arg0: i32, %arg1: i32) -> (i32, i32) {
    %c0_i32 = arith.constant 0 : i32
    %c0_i32_0 = arith.constant 0 : i32
    return %arg0, %c0_i32 : i32, i32
  }
  func.func @transform_4(%arg0: i32, %arg1: i32) -> (i32, i32) {
    %c0_i32 = arith.constant 0 : i32
    %c0_i32_0 = arith.constant 0 : i32
    %c0_i32_1 = arith.constant 0 : i32
    return %c0_i32, %c0_i32_0 : i32, i32
  }
  func.func @transform_5(%arg0: i32, %arg1: i32) -> (i32, i32) {
    %c0_i32 = arith.constant 0 : i32
    %c0_i32_0 = arith.constant 0 : i32
    %c0_i32_1 = arith.constant 0 : i32
    return %c0_i32, %c0_i32_0 : i32, i32
  }
  func.func @transform_6(%arg0: i32, %arg1: i32) -> (i32, i32) {
    %c0_i32 = arith.constant 0 : i32
    %c0_i32_0 = arith.constant 0 : i32
    return %arg0, %c0_i32 : i32, i32
  }
}

module attributes {stable_mosaic.version = 11 : i64} {
  func.func @_layernorm_kernel(%arg0: i32, %arg1: memref<8x32xbf16, #tpu.memory_space<vmem>>, %arg2: memref<1x32xf32, #tpu.memory_space<vmem>>, %arg3: memref<1x32xf32, #tpu.memory_space<vmem>>, %arg4: memref<8x32xf32, #tpu.memory_space<vmem>>) attributes {dimension_semantics = [#tpu.dimension_semantics<parallel>], iteration_bounds = array<i64: 2>, scalar_prefetch = 0 : i64, scratch_operands = 0 : i64, tpu.core_type = #tpu.core_type<tc>, window_params = [{transform_indices = @transform_0, window_bounds = array<i64: 8, 32>}, {pipeline_mode = #tpu.pipeline_mode<synchronous>, transform_indices = @transform_1, window_bounds = array<i64: 1, 32>}, {pipeline_mode = #tpu.pipeline_mode<synchronous>, transform_indices = @transform_2, window_bounds = array<i64: 1, 32>}, {transform_indices = @transform_3, window_bounds = array<i64: 8, 32>}]} {
    %c0 = arith.constant 0 : index
    %c0_0 = arith.constant 0 : index
    %0 = vector.load %arg1[%c0, %c0_0] : memref<8x32xbf16, #tpu.memory_space<vmem>>, vector<8x32xbf16>
    %1 = arith.extf %0 : vector<8x32xbf16> to vector<8x32xf32>
    %cst = arith.constant dense<0.000000e+00> : vector<8xf32>
    %2 = vector.multi_reduction <add>, %1, %cst [1] : vector<8x32xf32> to vector<8xf32>
    %3 = vector.shape_cast %2 : vector<8xf32> to vector<8x1xf32>
    %cst_1 = arith.constant 3.200000e+01 : f32
    %4 = vector.broadcast %cst_1 : f32 to vector<8x1xf32>
    %5 = arith.divf %3, %4 : vector<8x1xf32>
    %6 = vector.broadcast %5 : vector<8x1xf32> to vector<8x32xf32>
    %7 = arith.subf %1, %6 : vector<8x32xf32>
    %8 = arith.mulf %7, %7 : vector<8x32xf32>
    %cst_2 = arith.constant dense<0.000000e+00> : vector<8xf32>
    %9 = vector.multi_reduction <add>, %8, %cst_2 [1] : vector<8x32xf32> to vector<8xf32>
    %10 = vector.shape_cast %9 : vector<8xf32> to vector<8x1xf32>
    %cst_3 = arith.constant 3.200000e+01 : f32
    %11 = vector.broadcast %cst_3 : f32 to vector<8x1xf32>
    %12 = arith.divf %10, %11 : vector<8x1xf32>
    %13 = vector.broadcast %5 : vector<8x1xf32> to vector<8x32xf32>
    %14 = arith.subf %1, %13 : vector<8x32xf32>
    %cst_4 = arith.constant 9.99999974E-6 : f32
    %15 = vector.broadcast %cst_4 : f32 to vector<8x1xf32>
    %16 = arith.addf %12, %15 : vector<8x1xf32>
    %17 = math.rsqrt %16 : vector<8x1xf32>
    %18 = vector.broadcast %17 : vector<8x1xf32> to vector<8x32xf32>
    %19 = arith.mulf %14, %18 : vector<8x32xf32>
    %c0_5 = arith.constant 0 : index
    %c0_6 = arith.constant 0 : index
    %20 = vector.load %arg2[%c0_5, %c0_6] : memref<1x32xf32, #tpu.memory_space<vmem>>, vector<1x32xf32>
    %21 = vector.broadcast %20 : vector<1x32xf32> to vector<8x32xf32>
    %22 = arith.mulf %19, %21 : vector<8x32xf32>
    %c0_7 = arith.constant 0 : index
    %c0_8 = arith.constant 0 : index
    %23 = vector.load %arg3[%c0_7, %c0_8] : memref<1x32xf32, #tpu.memory_space<vmem>>, vector<1x32xf32>
    %24 = vector.broadcast %23 : vector<1x32xf32> to vector<8x32xf32>
    %25 = arith.addf %22, %24 : vector<8x32xf32>
    %c0_9 = arith.constant 0 : index
    %c0_10 = arith.constant 0 : index
    %26 = vector.load %arg4[%c0_9, %c0_10] : memref<8x32xf32, #tpu.memory_space<vmem>>, vector<8x32xf32>
    tpu.vector_store %arg4[%c0_9, %c0_10], %25 {strides = array<i32>} : memref<8x32xf32, #tpu.memory_space<vmem>>, vector<8x32xf32>,
    return
  }
  func.func @transform_0(%arg0: i32) -> (i32, i32) {
    %c0_i32 = arith.constant 0 : i32
    %c0_i32_0 = arith.constant 0 : i32
    return %arg0, %c0_i32 : i32, i32
  }
  func.func @transform_1(%arg0: i32) -> (i32, i32) {
    %c0_i32 = arith.constant 0 : i32
    %c0_i32_0 = arith.constant 0 : i32
    %c0_i32_1 = arith.constant 0 : i32
    return %c0_i32, %c0_i32_0 : i32, i32
  }
  func.func @transform_2(%arg0: i32) -> (i32, i32) {
    %c0_i32 = arith.constant 0 : i32
    %c0_i32_0 = arith.constant 0 : i32
    %c0_i32_1 = arith.constant 0 : i32
    return %c0_i32, %c0_i32_0 : i32, i32
  }
  func.func @transform_3(%arg0: i32) -> (i32, i32) {
    %c0_i32 = arith.constant 0 : i32
    %c0_i32_0 = arith.constant 0 : i32
    return %arg0, %c0_i32 : i32, i32
  }
}

</mosaic_0001>

<bundles_post_ra>
// kernel: transformer_encoder.13
= control target key start
LH: loop header
LB: loop body
LE: loop exit
PB: predicated region body
PF: predicated region fallthrough
CT: control target
= control target key end

     0   :  { %s639_s21 = smov 0   ;;  %s641_s22 = smov 0   ;;  %s700_s0 = inlined_call_operand.vmem [shape: bf16[16,32], index: 0, kind: input, shape index: {}]   ;;  %s701_s1 = inlined_call_operand.vmem [shape: bf16[32,32], index: 1, kind: input, shape index: {}]   ;;  %s702_s2 = inlined_call_operand.vmem [shape: f32[1,32], index: 2, kind: input, shape index: {}]   ;;  %s703_s3 = inlined_call_operand.vmem [shape: bf16[16,32], index: 3, kind: input, shape index: {}]   ;;  %s704_s4 = inlined_call_operand.vmem [shape: f32[1,32], index: 4, kind: input, shape index: {}]   ;;  %s705_s5 = inlined_call_operand.vmem [shape: f32[1,32], index: 5, kind: input, shape index: {}]   ;;  %s706_s6 = inlined_call_operand.vmem [shape: bf16[16,32], index: 6, kind: output, shape index: {}]  }
   0x1   :  { %s643_s23 = smov 0  }
   0x2 LB: > { %s28_s24 = sadd.s32 1, %s596_s22  ;;  %p525_p0 = scmp.ge.s32.totalorder %s600_s23, 1  ;;  %s600_s23 = sphi %s643_s23, %s16_s23   ;;  %s596_s22 = sphi %s641_s22, %s708_s22   ;;  %s592_s21 = sphi %s639_s21, %s707_s21  }
   0x3   : > { %p30_p1 = scmp.ge.s32.totalorder %s28_s24, 2  ;;  %p248_p2 = scmp.lt.s32.totalorder %s600_s23, 3 }
   0x5   : > { %s710_s24 = smov (%p30_p1, %s28_s24), 0  ;;  %p249_p3 = pnand %p525_p0, %p248_p2 }
   0x6   : > { %p288_p4 = scmp.lt.s32.totalorder (!%p249_p3), %s592_s21, 1 }
   0x7   : > { %252 = sbr.rel (%p249_p3) target bundleno = 539 (0x21b), region = 44 }
   0xc   : > { %v574_v0 = vld [vmem:[%s701_s1 + $0x8] sm:$0xff]   ;;  %v602_v1 = vmov 0.0   ;;  %v575_v2 = vld [vmem:[%s701_s1] sm:$0xff]   ;;  %vm603_vm0 = vmmov 0   ;;  %vm314_vm1 = vcmask 261120   ;;  %s712_s21 = smov (!%p288_p4, %s592_s21), 1 }
   0xd   : > { %540 = vmatprep.subr.bf16.mxu0 %v602_v1  ;;  %544 = vmatprep.mubr.msk.bf16.mxu0 %vm603_vm0, %v602_v1  ;;  %315 = vst.msk [vmem:[#allocation2] sm:$0xff] %vm314_vm1, %v602_v1  ;;  %s664_s29 = sshll.u32 %s712_s21, 2  ;;  %v532_v11 = vld [vmem:[%s702_s2] ss:$0 sm:$0xff]  ;;  %vm426_vm2 = vcmask 257024  }
   0xe   : > { %541 = vmatpush3.bf16.msra.mxu0 %v574_v0  ;;  %s294_s8 = scalar_lea.vmem %s700_s0, %s664_s29  ;;  %s304_s11 = scalar_lea.vmem %s703_s3, %s664_s29  ;;  %v533_v26 = vld [vmem:[%s704_s4] ss:$0 sm:$0xff] }
   0xf   : > { %542 = vmatprep.subr.bf16.mxu0 %v602_v1  ;;  %v317_v3 = vld [vmem:[%s294_s8] sm:$0xf]  ;;  %s308_s20 = scalar_lea.vmem %s706_s6, %s664_s29 }
  0x10   : > { %v392_v10 = vld [vmem:[%s304_s11] sm:$0xf] }
  0x11   : > { %v393_v12 = vunpack.c.l.bf16 %v392_v10  ;;  %v534_v28 = vld [vmem:[%s705_s5] ss:$0 sm:$0xff] }
  0x12   : > { %543 = vmatpush3.bf16.msra.mxu0 %v575_v2 }
  0x14   : > { %v316_v4 = vld [vmem:[#allocation2] sm:$0xff] }
  0x15   : > { %545 = vmatmul.mubr.msk.bf16.vlgmr.msra.gmra.mxu0 %vm314_vm1, %v317_v3 }
  0xd5   : > { %v372_v5 = vpop.f32.mrf.mxu0 }
  0xd6   : > { %v378_v6 = vadd.f32 %v372_v5, %v316_v4 }
  0xd7   : > { %v546_v7 = vpop.f32.mrf.mxu0 }
  0xd8   : > { %379 = vst.msk [vmem:[#allocation2] sm:$0xff] %vm314_vm1, %v378_v6 }
  0xd9   : > { %v375_v8 = vpop.f32.mrf.mxu0 }
  0xdb   : > { %v547_v9 = vpop.f32.mrf.mxu0 }
  0xdf   : > { %v383_v13 = vld [vmem:[#allocation2] sm:$0xff] }
  0xe0   : > { %v391_v14 = vadd.f32 %v532_v11, %v383_v13 }
  0xe2   : > { %v394_v15 = vadd.f32 %v393_v12, %v391_v14 }
  0xe4   : > { %v395_v16 = vsel %vm314_vm1, %v394_v15, 0.0 }
  0xe5   : > { %396 = vadd.xlane.f32.xlu0 %v395_v16 }
 0x16e   : > { %v397_v17 = vpop.xlane.xlu0 %396 }
 0x16f   : > { %v399_v18 = vmul.f32 0.03125, %v397_v17 }
 0x171   : > { %v400_v19 = vsub.f32 %v394_v15, %v399_v18 }
 0x173   : > { %v401_v20 = vmul.f32 %v400_v19, %v400_v19 }
 0x175   : > { %v402_v21 = vsel %vm314_vm1, %v401_v20, 0.0 }
 0x176   : > { %403 = vadd.xlane.f32.xlu0 %v402_v21 }
 0x1ff   : > { %v404_v22 = vpop.xlane.xlu0 %403 }
 0x200   : > { %v405_v23 = vmul.f32 0.03125, %v404_v22 }
 0x202   : > { %v406_v24 = vadd.f32 1e-05, %v405_v23 }
 0x204   : > { %576 = vrsqrt.f32 %v406_v24 }
 0x211   : > { %v577_v25 = vpop.eup %576 }
 0x212   : > { %v408_v27 = vmul.f32 %v577_v25, %v400_v19 }
 0x214   : > { %v416_v29 = vmul.f32 %v533_v26, %v408_v27 }
 0x216   : > { %v424_v30 = vadd.f32 %v534_v28, %v416_v29 }
 0x218   : > { %v425_v31 = vpack.c.bf16 %v424_v30, %v424_v30 }
 0x21a   : > { %427 = vst.msk [vmem:[%s308_s20] sm:$0xf] %vm426_vm2, %v425_v31 }
 0x21b PF: > { %s16_s23 = sadd.s32 1, %s600_s23   ;;  %s707_s21 = smov %s596_s22 }
 0x21c   : > { %p13_p5 = scmp.ge.s32.totalorder %s16_s23, 4   ;;  %s708_s22 = smov %s710_s24 }
 0x21e   :  { %15 = sbr.rel (!%p13_p5) target bundleno = 2 (0x2), region = 88 }

// kernel: transformer_encoder.11
= control target key start
LH: loop header
LB: loop body
LE: loop exit
PB: predicated region body
PF: predicated region fallthrough
CT: control target
= control target key end

     0   :  { %s895_s15 = smov 0   ;;  %s897_s16 = smov 0   ;;  %s1007_s0 = inlined_call_operand.vmem [shape: bf16[16,32], index: 0, kind: input, shape index: {}]   ;;  %s1008_s1 = inlined_call_operand.vmem [shape: bf16[16,32], index: 1, kind: input, shape index: {}]   ;;  %s1009_s2 = inlined_call_operand.vmem [shape: bf16[3,32,32], index: 2, kind: input, shape index: {}]   ;;  %s1010_s3 = inlined_call_operand.vmem [shape: f32[3,1,32], index: 3, kind: input, shape index: {}]   ;;  %s1011_s4 = inlined_call_operand.vmem [shape: bf16[3,16,32], index: 4, kind: output, shape index: {}]  }
   0x1   :  { %s899_s17 = smov 0   ;;  %s901_s18 = smov 0  }
   0x2   :  { %s903_s19 = smov 0  }
   0x3 LB: > { %s710_s20 = sadd.s32 4294967295, %s866_s19   ;;  %s33_s21 = sadd.s32 1, %s862_s18  ;;  %s866_s19 = sphi %s903_s19, %s14_s19   ;;  %s862_s18 = sphi %s901_s18, %s1016_s18   ;;  %s858_s17 = sphi %s899_s17, %s1015_s17   ;;  %s854_s16 = sphi %s897_s16, %s1014_s16   ;;  %s850_s15 = sphi %s895_s15, %s1013_s15  }
   0x4   : > { %p35_p0 = scmp.ge.s32.totalorder %s33_s21, 2  ;;  %s152_s22 = sadd.s32 1, %s854_s16 }
   0x5   : > { %p162_p1 = scmp.ne.s32.totalorder %s854_s16, %s850_s15  ;;  %p163_p2 = scmp.eq.s32.totalorder %s710_s20, 1 }
   0x6   : > { %s1018_s21 = smov (%p35_p0, %s33_s21), 0  ;;  %p716_p4 = scmp.ge.s32.totalorder %s866_s19, 1 }
   0x7   : > { %p927_p3 = por %p163_p2, %p162_p1  ;;  %s147_s24 = ssub.s32 %s862_s18, %s1018_s21 }
   0x8   : > { %p225_p5 = scmp.lt.s32.totalorder %s866_s19, 3  ;;  %p150_p6 = scmp.eq.s32.totalorder %s147_s24, 0 }
   0xa   : > { %p226_p7 = pnand %p716_p4, %p225_p5 }
   0xb   : > { %s936_s25 = scalar_select %p150_p6, %s854_s16, %s152_s22  }
   0xc   : > { %229 = sbr.rel (%p226_p7) target bundleno = 254 (0xfe), region = 36  ;;  %p270_p8 = scmp.lt.s32.totalorder (!%p226_p7), %s858_s17, 1 }
   0xd   : > { %s267_s28 = sand.u32 (!%p226_p7), 1, %s850_s15  }
   0xe   : > { %s779_s29 = smul.u32 (!%p226_p7), 12, %s267_s28 }
  0x10   : > { %s269_s15 = scalar_lea.vmem (!%p226_p7), [#allocation3], %s779_s29 }
  0x11   : > { %v822_v0 = vld [vmem:[%s1009_s2 + $0x8] sm:$0xff]   ;;  %v868_v1 = vmov 0.0   ;;  %v823_v2 = vld [vmem:[%s1009_s2 + $0x18] sm:$0xff]   ;;  %v824_v3 = vld [vmem:[%s1009_s2] sm:$0xff]   ;;  %vm869_vm0 = vmmov 0   ;;  %vm301_vm1 = vcmask 261120  }
  0x12   : > { %755 = vmatprep.subr.bf16.mxu0 %v868_v1  ;;  %763 = vmatprep.subr.bf16.mxu1 %v868_v1  ;;  %v825_v4 = vld [vmem:[%s1009_s2 + $0x10] sm:$0xff]   ;;  %s271_s8 = scalar_select %p270_p8, %s858_s17, 1  ;;  %302 = vst.msk [vmem:[#allocation2] sm:$0xff] %vm301_vm1, %v868_v1  ;;  %303 = vst.msk [vmem:[#allocation2 + $0x8] sm:$0xff] %vm301_vm1, %v868_v1  ;;  %v826_v10 = vld [vmem:[%s1009_s2 + $0x28] sm:$0xff]   ;;  %vm512_vm2 = vcmask 257024  }
  0x13   : > { %756 = vmatpush3.bf16.msra.mxu0 %v822_v0  ;;  %759 = vmatprep.mubr.msk.bf16.mxu0 %vm869_vm0, %v868_v1  ;;  %304 = vst.msk [vmem:[#allocation2 + $0x10] sm:$0xff] %vm301_vm1, %v868_v1  ;;  %v827_v12 = vld [vmem:[%s1009_s2 + $0x20] sm:$0xff]   ;;  %s743_s10 = sshll.u32 (%p927_p3), %s858_s17, 2 }
  0x14   : > { %757 = vmatprep.subr.bf16.mxu0 %v868_v1  ;;  %764 = vmatpush3.bf16.msra.mxu1 %v823_v2  ;;  %s717_s9 = sshll.u32 %s271_s8, 2  ;;  %v736_v26 = vld [vmem:[%s1010_s3] ss:$0 sm:$0xff]  ;;  %v738_v27 = vld [vmem:[%s1010_s3 + $0x1] ss:$0 sm:$0xff]  ;;  %s549_s13 = scalar_lea.vmem (%p927_p3), %s1011_s4, %s743_s10 }
  0x15   : > { %765 = vmatprep.subr.bf16.mxu1 %v868_v1  ;;  %767 = vmatprep.mubr.msk.bf16.mxu1 %vm869_vm0, %v868_v1  ;;  %s276_s12 = scalar_lea.vmem %s1007_s0, %s717_s9  ;;  %s283_s20 = scalar_lea.vmem %s1008_s1, %s717_s9  ;;  %v741_v39 = vld [vmem:[%s1010_s3 + $0x2] ss:$0 sm:$0xff] }
  0x16   : > { %v305_v5 = vld [vmem:[%s276_s12] sm:$0xf] }
  0x17   : > { %758 = vmatpush3.bf16.msra.mxu0 %v824_v3  ;;  %v307_v6 = vld [vmem:[%s283_s20] sm:$0xf]  ;;  %v306_v7 = vunpack.c.l.bf16 %v305_v5 }
  0x18   : > { %766 = vmatpush3.bf16.msra.mxu1 %v825_v4  ;;  %771 = vmatprep.subr.bf16.mxu0 %v868_v1  ;;  %v308_v8 = vunpack.c.l.bf16 %v307_v6 }
  0x19   : > { %v311_v13 = vld [vmem:[#allocation2] sm:$0xff]  ;;  %v375_v14 = vld [vmem:[#allocation2 + $0x8] sm:$0xff] }
  0x1a   : > { %v309_v9 = vadd.f32 %v308_v8, %v306_v7  ;;  %v436_v25 = vld [vmem:[#allocation2 + $0x10] sm:$0xff] }
  0x1c   : > { %v310_v11 = vpack.c.bf16 %v309_v9, %v309_v9 }
  0x1e   : > { %760 = vmatmul.mubr.msk.bf16.vlgmr.msra.gmra.mxu0 %vm301_vm1, %v310_v11  ;;  %768 = vmatmul.mubr.msk.bf16.vlgmr.msra.gmra.mxu1 %vm301_vm1, %v310_v11 }
  0x1f   : > { %772 = vmatpush3.bf16.msra.mxu0 %v826_v10  ;;  %775 = vmatprep.mubr.msk.bf16.mxu0 %vm869_vm0, %v868_v1 }
  0x20   : > { %773 = vmatprep.subr.bf16.mxu0 %v868_v1 }
  0x23   : > { %774 = vmatpush3.bf16.msra.mxu0 %v827_v12 }
  0x26   : > { %776 = vmatmul.mubr.msk.bf16.vlgmr.msra.gmra.mxu0 %vm301_vm1, %v305_v5 }
  0xde   : > { %v366_v15 = vpop.f32.mrf.mxu0  ;;  %v427_v16 = vpop.f32.mrf.mxu1 }
  0xdf   : > { %v372_v17 = vadd.f32 %v366_v15, %v311_v13  ;;  %v433_v18 = vadd.f32 %v427_v16, %v375_v14 }
  0xe0   : > { %v761_v19 = vpop.f32.mrf.mxu0  ;;  %v769_v20 = vpop.f32.mrf.mxu1 }
  0xe1   : > { %373 = vst.msk [vmem:[#allocation2] sm:$0xff] %vm301_vm1, %v372_v17  ;;  %434 = vst.msk [vmem:[#allocation2 + $0x8] sm:$0xff] %vm301_vm1, %v433_v18 }
  0xe2   : > { %v369_v21 = vpop.f32.mrf.mxu0  ;;  %v430_v22 = vpop.f32.mrf.mxu1 }
  0xe4   : > { %v762_v23 = vpop.f32.mrf.mxu0  ;;  %v770_v24 = vpop.f32.mrf.mxu1 }
  0xe6   : > { %v491_v28 = vpop.f32.mrf.mxu0 }
  0xe7   : > { %v497_v29 = vadd.f32 %v491_v28, %v436_v25 }
  0xe8   : > { %v502_v30 = vld [vmem:[#allocation2] sm:$0xff]  ;;  %v514_v31 = vld [vmem:[#allocation2 + $0x8] sm:$0xff]  ;;  %v777_v32 = vpop.f32.mrf.mxu0 }
  0xe9   : > { %v510_v33 = vadd.f32 %v736_v26, %v502_v30  ;;  %v523_v34 = vadd.f32 %v738_v27, %v514_v31  ;;  %498 = vst.msk [vmem:[#allocation2 + $0x10] sm:$0xff] %vm301_vm1, %v497_v29 }
  0xea   : > { %v494_v35 = vpop.f32.mrf.mxu0 }
  0xeb   : > { %v511_v36 = vpack.c.bf16 %v510_v33, %v510_v33  ;;  %v524_v37 = vpack.c.bf16 %v523_v34, %v523_v34 }
  0xec   : > { %v778_v38 = vpop.f32.mrf.mxu0 }
  0xed   : > { %513 = vst.msk [vmem:[%s269_s15] sm:$0xf] %vm512_vm2, %v511_v36  ;;  %739 = vst.msk [vmem:[%s269_s15 + $0x4] sm:$0xf] %vm512_vm2, %v524_v37 }
  0xf0   : > { %v527_v40 = vld [vmem:[#allocation2 + $0x10] sm:$0xff] }
  0xf1   : > { %v536_v41 = vadd.f32 %v741_v39, %v527_v40  ;;  %546 = sbr.rel (!%p927_p3) target bundleno = 254 (0xfe), region = 48 }
  0xf3   : > { %v537_v42 = vpack.c.bf16 %v536_v41, %v536_v41 }
  0xf4   : > { %v566_v43 = vld [vmem:[%s269_s15] sm:$0xf] (%p927_p3)  ;;  %v568_v44 = vld [vmem:[%s269_s15 + $0x4] sm:$0xf] (%p927_p3) }
  0xf5   : > { %742 = vst.msk [vmem:[%s269_s15 + $0x8] sm:$0xf] %vm512_vm2, %v537_v42  ;;  %567 = vst [vmem:[%s549_s13] sm:$0xf] (%p927_p3), %v566_v43 }
  0xf6   : > { %569 = vst [vmem:[%s549_s13 + $0x8] sm:$0xf] %v568_v44 }
  0xfc   : > { %v570_v45 = vld [vmem:[%s269_s15 + $0x8] sm:$0xf] }
  0xfd   : > { %571 = vst [vmem:[%s549_s13 + $0x10] sm:$0xf] %v570_v45 }
  0xfe PF: > { %s14_s19 = sadd.s32 1, %s866_s19   ;;  %s1013_s15 = smov %s854_s16 }
  0xff   : > { %p11_p9 = scmp.ge.s32.totalorder %s14_s19, 4   ;;  %s1014_s16 = smov %s936_s25 }
 0x100   : > { %s1015_s17 = smov %s862_s18  ;;  %s1016_s18 = smov %s1018_s21 }
 0x101   :  { %13 = sbr.rel (!%p11_p9) target bundleno = 3 (0x3), region = 132 }

// kernel: transformer_encoder.12
= control target key start
LH: loop header
LB: loop body
LE: loop exit
PB: predicated region body
PF: predicated region fallthrough
CT: control target
= control target key end

     0   :  { %s1049_s12 = smov 0   ;;  %s1051_s13 = smov 0   ;;  %s1164_s0 = inlined_call_operand.vmem [shape: bf16[3,2,8,32], index: 0, kind: input, shape index: {}, may-alias: {0,1,2}]   ;;  %s1165_s1 = inlined_call_operand.vmem [shape: bf16[3,2,8,32], index: 1, kind: input, shape index: {}, may-alias: {0,1,2}]   ;;  %s1166_s2 = inlined_call_operand.vmem [shape: bf16[3,2,8,32], index: 2, kind: input, shape index: {}, may-alias: {0,1,2}]   ;;  %s1167_s3 = inlined_call_operand.vmem [shape: bf16[2,8,32], index: 3, kind: output, shape index: {}]  }
   0x1   :  { %s1053_s14 = smov 0  }
   0x2 LB: > { %s25_s15 = sadd.s32 1, %s1015_s13  ;;  %p844_p0 = scmp.ge.s32.totalorder %s1019_s14, 1  ;;  %s1019_s14 = sphi %s1053_s14, %s13_s14   ;;  %s1015_s13 = sphi %s1051_s13, %s1169_s13   ;;  %s1011_s12 = sphi %s1049_s12, %s1168_s12  }
   0x3   : > { %p27_p1 = scmp.ge.s32.totalorder %s25_s15, 2  ;;  %p175_p2 = scmp.lt.s32.totalorder %s1019_s14, 3 }
   0x5   : > { %s1171_s15 = smov (%p27_p1, %s25_s15), 0  ;;  %p176_p3 = pnand %p844_p0, %p175_p2 }
   0x6   : > { %p213_p4 = scmp.lt.s32.totalorder (!%p176_p3), %s1011_s12, 1  ;;  %s1023_s23 = smov (!%p176_p3), 120  }
   0x7   : > { %179 = sbr.rel (%p176_p3) target bundleno = 1418 (0x58a), region = 32  ;;  %s1024_s24 = smov (!%p176_p3), 112  }
   0x8   : > { %s1025_s25 = smov (!%p176_p3), 104   ;;  %s1026_s29 = smov (!%p176_p3), 8  }
   0x9   : > { %s1027_s30 = smov (!%p176_p3), 16   ;;  %s1028_s4 = smov (!%p176_p3), 24  }
   0xc   : > { %v1021_v0 = vmov 0.0   ;;  %vm1022_vm0 = vmmov 0   ;;  %s1173_s12 = smov (!%p213_p4, %s1011_s12), 1  ;;  %vm240_vm1 = vcmask 64512   ;;  %vm303_vm2 = vcmask 1043456  }
   0xd   : > { %892 = vmatprep.subr.bf16.mxu0 %v1021_v0  ;;  %894 = vmatprep.mubr.msk.bf16.mxu0 %vm1022_vm0, %v1021_v0  ;;  %s1073_s16 = sshll.u32 %s1173_s12, 2  ;;  %vm474_vm3 = vcmask 130112   ;;  %vm602_vm4 = vcmask 195712   ;;  %vm730_vm5 = vcmask 261312   ;;  %vm734_vm6 = vcmask 257024  }
   0xe   : > { %898 = vmatprep.subr.bf16.mxu1 %v1021_v0  ;;  %900 = vmatprep.mubr.msk.bf16.mxu1 %vm1022_vm0, %v1021_v0  ;;  %s1079_s19 = scalar_lea.vmem %s1165_s1, %s1073_s16  ;;  %s219_s22 = scalar_lea.vmem %s1164_s0, %s1073_s16 }
   0xf   : > { %v849_v1 = vld [vmem:[%s1079_s19 + $0x8] sm:$0xf]  ;;  %v238_v3 = vld [vmem:[%s219_s22] sm:$0xf]  ;;  %s1104_s28 = scalar_lea.vmem %s1166_s2, %s1073_s16  ;;  %s236_s7 = scalar_lea.vmem %s1167_s3, %s1073_s16 }
  0x10   : > { %v245_v2 = vsel %vm240_vm1, %v849_v1, 0  ;;  %v972_v9 = vld [vmem:[%s1079_s19 + $0x8] ss:$0 sps:$4 sm:$0xff]   ;;  %v973_v10 = vld [vmem:[%s219_s22] ss:$0 sps:$4 sm:$0xff]  }
  0x11   : > { %893 = vmatpush3.bf16.xpose.msra.mxu0 %v245_v2  ;;  %358 = vrot.lane.b32.xlu1 %v972_v9, %s1023_s23  ;;  %v975_v11 = vld [vmem:[%s219_s22] ss:$0 sps:$4 sm:$0xff]   ;;  %v976_v12 = vld [vmem:[%s1079_s19 + $0x8] ss:$0 sps:$4 sm:$0xff]   ;;  %v851_v19 = vld [vmem:[%s1104_s28 + $0x10] sm:$0xf] }
  0x12   : > { %910 = vmatprep.subr.bf16.mxu0 %v1021_v0  ;;  %v977_v13 = vld [vmem:[%s219_s22] ss:$0 sps:$4 sm:$0xff]   ;;  %v305_v20 = vsel %vm303_vm2, %v851_v19, 0  ;;  %v974_v21 = vld [vmem:[%s1079_s19 + $0x8] ss:$0 sps:$4 sm:$0xff]  }
  0x13   : > { %899 = vmatpush3.bf16.msra.mxu1 %v305_v20  ;;  %v978_v1 = vld [vmem:[%s1104_s28 + $0x10] ss:$0 sps:$4 sm:$0xff]  }
  0x14   : > { %904 = vmatprep.subr.bf16.mxu1 %v1021_v0 }
  0x15   : > { %353 = vrot.lane.b32.xlu1 %v973_v10, %s1023_s23 }
  0x18   : > { %895 = vmatmul.mubr.msk.bf16.vlgmr.msra.gmra.mxu0 %vm240_vm1, %v238_v3  ;;  %v979_v3 = vld [vmem:[%s1104_s28 + $0x10] ss:$0 sps:$4 sm:$0xff]  }
  0x19   : > { %912 = vmatprep.mubr.msk.bf16.mxu0 %vm1022_vm0, %v1021_v0  ;;  %481 = vrot.lane.b32.xlu1 %v975_v11, %s1024_s24 }
  0x1d   : > { %614 = vrot.lane.b32.xlu1 %v976_v12, %s1025_s25 }
  0x21   : > { %609 = vrot.lane.b32.xlu1 %v977_v13, %s1025_s25 }
  0x83   : > { %v359_v24 = vpop.permute.xlu1 %358 }
  0x84   : > { %v364_v26 = vsel %vm240_vm1, %v359_v24, 0 }
  0x87   : > { %v354_v28 = vpop.permute.xlu1 %353 }
  0x8b   : > { %v482_v30 = vpop.permute.xlu1 %481 }
  0x8f   : > { %v615_v32 = vpop.permute.xlu1 %614 }
  0x90   : > { %v620_v33 = vsel %vm240_vm1, %v615_v32, 0 }
  0x93   : > { %v610_v34 = vpop.permute.xlu1 %609 }
  0xd8   : > { %v281_v4 = vpop.f32.mrf.mxu0 }
  0xd9   : > { %v287_v5 = vsel %vm240_vm1, %v281_v4, -inf }
  0xda   : > { %288 = vmax.xlane.f32.xlu0 %v287_v5  ;;  %v896_v6 = vpop.f32.mrf.mxu0 }
  0xdc   : > { %v284_v7 = vpop.f32.mrf.mxu0 }
  0xde   : > { %v897_v8 = vpop.f32.mrf.mxu0 }
  0xdf   : > { %v980_v8 = vld [vmem:[%s1104_s28 + $0x10] ss:$0 sps:$4 sm:$0xff]  }
 0x163   : > { %v289_v14 = vpop.xlane.xlu0 %288 }
 0x164   : > { %v290_v15 = vsub.f32 %v281_v4, %v289_v14 }
 0x166   : > { %v291_v16 = vmul.f32 1.442695, %v290_v15 }
 0x168   : > { %981 = vpow2.f32 %v291_v16 }
 0x175   : > { %v982_v17 = vpop.eup %981 }
 0x176   : > { %v293_v18 = vsel %vm240_vm1, %v982_v17, 0.0 }
 0x177   : > { %294 = vadd.xlane.f32.xlu0 %v293_v18 }
 0x18d   : > { %486 = vrot.lane.b32.xlu0 %v974_v21, %s1024_s24 }
 0x200   : > { %v295_v22 = vpop.xlane.xlu0 %294 }
 0x201   : > { %983 = vrcp.f32 %v295_v22 }
 0x204   : > { %v487_v29 = vpop.permute.xlu0 %486 }
 0x205   : > { %v492_v31 = vsel %vm240_vm1, %v487_v29, 0 }
 0x20e   : > { %v984_v23 = vpop.eup %983 }
 0x20f   : > { %v297_v25 = vmul.f32 %v984_v23, %v982_v17 }
 0x211   : > { %v298_v27 = vpack.c.bf16 %v297_v25, %v297_v25 }
 0x213   : > { %901 = vmatmul.mubr.msk.bf16.vlgmr.msra.gmra.mxu1 %vm240_vm1, %v298_v27 }
 0x214   : > { %905 = vmatpush3.bf16.xpose.msra.mxu1 %v364_v26  ;;  %906 = vmatprep.mubr.msk.bf16.mxu1 %vm1022_vm0, %v1021_v0 }
 0x215   : > { %916 = vmatprep.subr.bf16.mxu1 %v1021_v0 }
 0x21b   : > { %907 = vmatmul.mubr.msk.bf16.vlgmr.msra.gmra.mxu1 %vm240_vm1, %v354_v28 }
 0x21c   : > { %917 = vmatpush3.bf16.xpose.msra.mxu1 %v492_v31  ;;  %918 = vmatprep.mubr.msk.bf16.mxu1 %vm1022_vm0, %v1021_v0 }
 0x21d   : > { %928 = vmatprep.subr.bf16.mxu1 %v1021_v0 }
 0x223   : > { %919 = vmatmul.mubr.msk.bf16.vlgmr.msra.gmra.mxu1 %vm240_vm1, %v482_v30 }
 0x224   : > { %929 = vmatpush3.bf16.xpose.msra.mxu1 %v620_v33  ;;  %930 = vmatprep.mubr.msk.bf16.mxu1 %vm1022_vm0, %v1021_v0 }
 0x22b   : > { %931 = vmatmul.mubr.msk.bf16.vlgmr.msra.gmra.mxu1 %vm240_vm1, %v610_v34 }
 0x2d3   : > { %v341_v35 = vpop.f32.mrf.mxu1 }
 0x2d4   : > { %347 = vst.msk [vmem:[#allocation2] sm:$0xff] %vm240_vm1, %v341_v35 }
 0x2d5   : > { %v902_v36 = vpop.f32.mrf.mxu1 }
 0x2d7   : > { %v344_v37 = vpop.f32.mrf.mxu1 }
 0x2d9   : > { %v903_v38 = vpop.f32.mrf.mxu1 }
 0x2db   : > { %v400_v39 = vpop.f32.mrf.mxu1 }
 0x2dc   : > { %v406_v40 = vsel %vm240_vm1, %v400_v39, -inf }
 0x2dd   : > { %407 = vmax.xlane.f32.xlu1 %v406_v40  ;;  %v908_v41 = vpop.f32.mrf.mxu1 }
 0x2df   : > { %v403_v42 = vpop.f32.mrf.mxu1 }
 0x2e1   : > { %v909_v43 = vpop.f32.mrf.mxu1 }
 0x2e3   : > { %v528_v44 = vpop.f32.mrf.mxu1 }
 0x2e4   : > { %v534_v45 = vsel %vm240_vm1, %v528_v44, -inf }
 0x2e5   : > { %535 = vmax.xlane.f32.xlu0 %v534_v45  ;;  %v920_v46 = vpop.f32.mrf.mxu1 }
 0x2e7   : > { %v531_v47 = vpop.f32.mrf.mxu1 }
 0x2e9   : > { %v921_v48 = vpop.f32.mrf.mxu1 }
 0x2eb   : > { %v656_v49 = vpop.f32.mrf.mxu1 }
 0x2ec   : > { %v662_v50 = vsel %vm240_vm1, %v656_v49, -inf }
 0x2ed   : > { %663 = vmax.xlane.f32.xlu1 %v662_v50  ;;  %v932_v51 = vpop.f32.mrf.mxu1 }
 0x2ef   : > { %v659_v52 = vpop.f32.mrf.mxu1 }
 0x2f1   : > { %v933_v53 = vpop.f32.mrf.mxu1 }
 0x366   : > { %v408_v54 = vpop.xlane.xlu1 %407 }
 0x367   : > { %v409_v55 = vsub.f32 %v400_v39, %v408_v54 }
 0x369   : > { %v410_v56 = vmul.f32 1.442695, %v409_v55 }
 0x36b   : > { %985 = vpow2.f32 %v410_v56 }
 0x36e   : > { %v536_v57 = vpop.xlane.xlu0 %535 }
 0x36f   : > { %v537_v58 = vsub.f32 %v528_v44, %v536_v57 }
 0x371   : > { %v538_v59 = vmul.f32 1.442695, %v537_v58 }
 0x373   : > { %987 = vpow2.f32 %v538_v59 }
 0x376   : > { %v664_v2 = vpop.xlane.xlu1 %663 }
 0x377   : > { %v665_v4 = vsub.f32 %v656_v49, %v664_v2 }
 0x378   : > { %v986_v60 = vpop.eup %985 }
 0x379   : > { %v412_v61 = vsel %vm240_vm1, %v986_v60, 0.0  ;;  %v666_v5 = vmul.f32 1.442695, %v665_v4 }
 0x37a   : > { %413 = vadd.xlane.f32.xlu1 %v412_v61 }
 0x37b   : > { %989 = vpow2.f32 %v666_v5 }
 0x380   : > { %v988_v62 = vpop.eup %987 }
 0x381   : > { %v540_v63 = vsel %vm240_vm1, %v988_v62, 0.0 }
 0x382   : > { %541 = vadd.xlane.f32.xlu0 %v540_v63 }
 0x388   : > { %v990_v6 = vpop.eup %989 }
 0x389   : > { %v668_v7 = vsel %vm240_vm1, %v990_v6, 0.0 }
 0x38b   : > { %550 = vrot.lane.b32.xlu1 %v978_v1, %s1024_s24 }
 0x398   : > { %422 = vrot.lane.b32.xlu0 %v979_v3, %s1023_s23 }
 0x3af   : > { %669 = vadd.xlane.f32.xlu1 %v668_v7 }
 0x3c0   : > { %678 = vrot.lane.b32.xlu1 %v980_v8, %s1025_s25 }
 0x403   : > { %v414_v9 = vpop.xlane.xlu1 %413 }
 0x404   : > { %991 = vrcp.f32 %v414_v9 }
 0x407   : > { %v551_v15 = vpop.permute.xlu1 %550 }
 0x408   : > { %v556_v17 = vsel %vm303_vm2, %v551_v15, 0 }
 0x40b   : > { %v542_v10 = vpop.xlane.xlu0 %541 }
 0x40c   : > { %993 = vrcp.f32 %v542_v10 }
 0x40f   : > { %v423_v11 = vpop.permute.xlu0 %422 }
 0x410   : > { %v428_v12 = vsel %vm303_vm2, %v423_v11, 0 }
 0x411   : > { %v992_v13 = vpop.eup %991  ;;  %911 = vmatpush3.bf16.msra.mxu0 %v428_v12 }
 0x412   : > { %922 = vmatprep.subr.bf16.mxu0 %v1021_v0  ;;  %v416_v14 = vmul.f32 %v992_v13, %v986_v60 }
 0x414   : > { %v417_v16 = vpack.c.bf16 %v416_v14, %v416_v14 }
 0x416   : > { %913 = vmatmul.mubr.msk.bf16.vlgmr.msra.gmra.mxu0 %vm240_vm1, %v417_v16 }
 0x417   : > { %923 = vmatpush3.bf16.msra.mxu0 %v556_v17  ;;  %924 = vmatprep.mubr.msk.bf16.mxu0 %vm1022_vm0, %v1021_v0 }
 0x418   : > { %934 = vmatprep.subr.bf16.mxu0 %v1021_v0 }
 0x419   : > { %v994_v18 = vpop.eup %993 }
 0x41a   : > { %v544_v19 = vmul.f32 %v994_v18, %v988_v62 }
 0x41c   : > { %v545_v20 = vpack.c.bf16 %v544_v19, %v544_v19 }
 0x41e   : > { %925 = vmatmul.mubr.msk.bf16.vlgmr.msra.gmra.mxu0 %vm240_vm1, %v545_v20 }
 0x41f   : > { %936 = vmatprep.mubr.msk.bf16.mxu0 %vm1022_vm0, %v1021_v0 }
 0x438   : > { %v670_v21 = vpop.xlane.xlu1 %669 }
 0x439   : > { %995 = vrcp.f32 %v670_v21 }
 0x43c   : > { %v679_v22 = vpop.permute.xlu1 %678 }
 0x43d   : > { %v684_v23 = vsel %vm303_vm2, %v679_v22, 0 }
 0x43e   : > { %935 = vmatpush3.bf16.msra.mxu0 %v684_v23 }
 0x446   : > { %v996_v24 = vpop.eup %995 }
 0x447   : > { %v672_v25 = vmul.f32 %v996_v24, %v990_v6 }
 0x449   : > { %v673_v26 = vpack.c.bf16 %v672_v25, %v672_v25 }
 0x44b   : > { %937 = vmatmul.mubr.msk.bf16.vlgmr.msra.gmra.mxu0 %vm240_vm1, %v673_v26 }
 0x4d6   : > { %v464_v27 = vpop.f32.mrf.mxu0 }
 0x4d7   : > { %471 = vrot.lane.b32.xlu0 %v464_v27, %s1026_s29 }
 0x4d8   : > { %v914_v28 = vpop.f32.mrf.mxu0 }
 0x4da   : > { %v467_v29 = vpop.f32.mrf.mxu0 }
 0x4dc   : > { %v915_v30 = vpop.f32.mrf.mxu0 }
 0x4de   : > { %v592_v31 = vpop.f32.mrf.mxu0 }
 0x4df   : > { %599 = vrot.lane.b32.xlu1 %v592_v31, %s1027_s30 }
 0x4e0   : > { %v926_v0 = vpop.f32.mrf.mxu0 }
 0x4e2   : > { %v595_v32 = vpop.f32.mrf.mxu0 }
 0x4e4   : > { %v927_v33 = vpop.f32.mrf.mxu0 }
 0x50b   : > { %v720_v34 = vpop.f32.mrf.mxu0 }
 0x50c   : > { %727 = vrot.lane.b32.xlu0 %v720_v34, %s1028_s4 }
 0x50d   : > { %v938_v35 = vpop.f32.mrf.mxu0 }
 0x50f   : > { %v723_v36 = vpop.f32.mrf.mxu0 }
 0x511   : > { %v939_v37 = vpop.f32.mrf.mxu0 }
 0x549   : > { %v472_v38 = vpop.permute.xlu0 %471 }
 0x54a   : > { %475 = vst.msk [vmem:[#allocation2] sm:$0xff] %vm474_vm3, %v472_v38 }
 0x551   : > { %v600_v39 = vpop.permute.xlu1 %599 }
 0x552   : > { %603 = vst.msk [vmem:[#allocation2] sm:$0xff] %vm602_vm4, %v600_v39 }
 0x57e   : > { %v728_v40 = vpop.permute.xlu0 %727 }
 0x57f   : > { %731 = vst.msk [vmem:[#allocation2] sm:$0xff] %vm730_vm5, %v728_v40 }
 0x586   : > { %v732_v41 = vld [vmem:[#allocation2] sm:$0xff] }
 0x587   : > { %v733_v42 = vpack.c.bf16 %v732_v41, %v732_v41 }
 0x589   : > { %735 = vst.msk [vmem:[%s236_s7] sm:$0xf] %vm734_vm6, %v733_v42 }
 0x58a PF: > { %s13_s14 = sadd.s32 1, %s1019_s14   ;;  %s1168_s12 = smov %s1015_s13 }
 0x58b   : > { %p10_p5 = scmp.ge.s32.totalorder %s13_s14, 4   ;;  %s1169_s13 = smov %s1171_s15 }
 0x58d   :  { %12 = sbr.rel (!%p10_p5) target bundleno = 2 (0x2), region = 68 }

// kernel: transformer_encoder.14
= control target key start
LH: loop header
LB: loop body
LE: loop exit
PB: predicated region body
PF: predicated region fallthrough
CT: control target
= control target key end

     0   :  { %s547_s12 = smov 0   ;;  %s549_s13 = smov 0   ;;  %s591_s0 = inlined_call_operand.vmem [shape: bf16[16,32], index: 0, kind: input, shape index: {}]   ;;  %s592_s1 = inlined_call_operand.vmem [shape: bf16[32,64], index: 1, kind: input, shape index: {}]   ;;  %s593_s2 = inlined_call_operand.vmem [shape: f32[1,64], index: 2, kind: input, shape index: {}]   ;;  %s594_s3 = inlined_call_operand.vmem [shape: bf16[16,64], index: 3, kind: output, shape index: {}]  }
   0x1   :  { %s551_s14 = smov 0  }
   0x2 LB: > { %s32_s15 = sadd.s32 1, %s519_s13  ;;  %p453_p0 = scmp.ge.s32.totalorder %s523_s14, 1  ;;  %s523_s14 = sphi %s551_s14, %s13_s14   ;;  %s519_s13 = sphi %s549_s13, %s596_s13   ;;  %s515_s12 = sphi %s547_s12, %s595_s12  }
   0x3   : > { %p34_p1 = scmp.ge.s32.totalorder %s32_s15, 2  ;;  %p186_p2 = scmp.lt.s32.totalorder %s523_s14, 3 }
   0x5   : > { %s598_s15 = smov (%p34_p1, %s32_s15), 0  ;;  %p187_p3 = pnand %p453_p0, %p186_p2 }
   0x6   : > { %p225_p4 = scmp.lt.s32.totalorder (!%p187_p3), %s515_s12, 1 }
   0x7   : > { %190 = sbr.rel (%p187_p3) target bundleno = 231 (0xe7), region = 32 }
   0xc   : > { %vm256_vm0 = vcmask 523264   ;;  %v525_v0 = vmov 0.0   ;;  %v499_v1 = vld [vmem:[%s592_s1 + $0x8] sm:$0xff]   ;;  %vm526_vm1 = vmmov 0   ;;  %v500_v2 = vld [vmem:[%s592_s1] sm:$0xff]   ;;  %s600_s12 = smov (!%p225_p4, %s515_s12), 1 }
   0xd   : > { %257 = vst.msk [vmem:[#allocation2] sm:$0xff] %vm256_vm0, %v525_v0  ;;  %465 = vmatprep.subr.bf16.mxu0 %v525_v0  ;;  %469 = vmatprep.mubr.msk.bf16.mxu0 %vm526_vm1, %v525_v0  ;;  %s454_s20 = sshll.u32 %s600_s12, 2  ;;  %vm276_vm2 = vcmask 261120   ;;  %v459_v10 = vld [vmem:[%s593_s2] ss:$0 sm:$0xff]  ;;  %vm337_vm3 = vcmask 519168  }
   0xe   : > { %466 = vmatpush3.bf16.msra.mxu0 %v499_v1  ;;  %s231_s23 = scalar_lea.vmem %s591_s0, %s454_s20  ;;  %s250_s28 = scalar_lea.vmem %s594_s3, %s454_s20 }
   0xf   : > { %467 = vmatprep.subr.bf16.mxu0 %v525_v0  ;;  %v259_v3 = vld [vmem:[%s231_s23] sm:$0xf] }
  0x12   : > { %468 = vmatpush3.bf16.msra.mxu0 %v500_v2 }
  0x14   : > { %v258_v4 = vld [vmem:[#allocation2] sm:$0xff] }
  0x15   : > { %470 = vmatmul.mubr.msk.bf16.vlgmr.msra.gmra.mxu0 %vm276_vm2, %v259_v3 }
  0xd5   : > { %v314_v5 = vpop.f32.mrf.mxu0 }
  0xd6   : > { %v320_v6 = vadd.f32 %v314_v5, %v258_v4 }
  0xd7   : > { %v471_v7 = vpop.f32.mrf.mxu0 }
  0xd8   : > { %322 = vst.msk [vmem:[#allocation2] sm:$0xff] %vm256_vm0, %v320_v6 }
  0xd9   : > { %v317_v8 = vpop.f32.mrf.mxu0 }
  0xdb   : > { %v472_v9 = vpop.f32.mrf.mxu0 }
  0xdf   : > { %v326_v11 = vld [vmem:[#allocation2] sm:$0xff] }
  0xe0   : > { %v334_v12 = vadd.f32 %v459_v10, %v326_v11 }
  0xe2   : > { %v335_v13 = vmax.f32 %v334_v12, 0.0 }
  0xe4   : > { %v336_v14 = vpack.c.bf16 %v335_v13, %v335_v13 }
  0xe6   : > { %338 = vst.msk [vmem:[%s250_s28] sm:$0xf] %vm337_vm3, %v336_v14 }
  0xe7 PF: > { %s13_s14 = sadd.s32 1, %s523_s14   ;;  %s595_s12 = smov %s519_s13 }
  0xe8   : > { %p10_p5 = scmp.ge.s32.totalorder %s13_s14, 4   ;;  %s596_s13 = smov %s598_s15 }
  0xea   :  { %12 = sbr.rel (!%p10_p5) target bundleno = 2 (0x2), region = 76 }

// kernel: transformer_encoder.15
= control target key start
LH: loop header
LB: loop body
LE: loop exit
PB: predicated region body
PF: predicated region fallthrough
CT: control target
= control target key end

     0   :  { %s666_s21 = smov 0   ;;  %s668_s22 = smov 0   ;;  %s732_s0 = inlined_call_operand.vmem [shape: bf16[16,64], index: 0, kind: input, shape index: {}]   ;;  %s733_s1 = inlined_call_operand.vmem [shape: bf16[64,32], index: 1, kind: input, shape index: {}]   ;;  %s734_s2 = inlined_call_operand.vmem [shape: f32[1,32], index: 2, kind: input, shape index: {}]   ;;  %s735_s3 = inlined_call_operand.vmem [shape: bf16[16,32], index: 3, kind: input, shape index: {}]   ;;  %s736_s4 = inlined_call_operand.vmem [shape: f32[1,32], index: 4, kind: input, shape index: {}]   ;;  %s737_s5 = inlined_call_operand.vmem [shape: f32[1,32], index: 5, kind: input, shape index: {}]   ;;  %s738_s6 = inlined_call_operand.vmem [shape: bf16[16,32], index: 6, kind: output, shape index: {}]  }
   0x1   :  { %s670_s23 = smov 0  }
   0x2 LB: > { %s28_s24 = sadd.s32 1, %s623_s22  ;;  %p542_p0 = scmp.ge.s32.totalorder %s627_s23, 1  ;;  %s627_s23 = sphi %s670_s23, %s16_s23   ;;  %s623_s22 = sphi %s668_s22, %s740_s22   ;;  %s619_s21 = sphi %s666_s21, %s739_s21  }
   0x3   : > { %p30_p1 = scmp.ge.s32.totalorder %s28_s24, 2  ;;  %p248_p2 = scmp.lt.s32.totalorder %s627_s23, 3 }
   0x5   : > { %s742_s24 = smov (%p30_p1, %s28_s24), 0  ;;  %p249_p3 = pnand %p542_p0, %p248_p2 }
   0x6   : > { %p288_p4 = scmp.lt.s32.totalorder (!%p249_p3), %s619_s21, 1 }
   0x7   : > { %252 = sbr.rel (%p249_p3) target bundleno = 547 (0x223), region = 44 }
   0xc   : > { %v599_v0 = vld [vmem:[%s733_s1 + $0x18] sm:$0xff]   ;;  %v629_v1 = vmov 0.0   ;;  %v600_v2 = vld [vmem:[%s733_s1 + $0x10] sm:$0xff]   ;;  %vm630_vm0 = vmmov 0   ;;  %s744_s21 = smov (!%p288_p4, %s619_s21), 1  ;;  %vm314_vm1 = vcmask 261120  }
   0xd   : > { %561 = vmatprep.subr.bf16.mxu0 %v629_v1  ;;  %569 = vmatprep.mubr.msk.bf16.mxu0 %vm630_vm0, %v629_v1  ;;  %315 = vst.msk [vmem:[#allocation2] sm:$0xff] %vm314_vm1, %v629_v1  ;;  %v601_v3 = vld [vmem:[%s733_s1 + $0x8] sm:$0xff]   ;;  %s694_s7 = sshll.u32 %s744_s21, 2  ;;  %v602_v4 = vld [vmem:[%s733_s1] sm:$0xff]   ;;  %vm350_vm2 = vcmask 523264   ;;  %vm443_vm3 = vcmask 257024  }
   0xe   : > { %562 = vmatpush3.bf16.msra.mxu0 %v599_v0  ;;  %s294_s12 = scalar_lea.vmem %s732_s0, %s694_s7  ;;  %s304_s15 = scalar_lea.vmem %s735_s3, %s694_s7  ;;  %v551_v13 = vld [vmem:[%s734_s2] ss:$0 sm:$0xff] }
   0xf   : > { %563 = vmatprep.subr.bf16.mxu0 %v629_v1  ;;  %v317_v5 = vld [vmem:[%s294_s12] sm:$0xf]  ;;  %s308_s27 = scalar_lea.vmem %s738_s6, %s694_s7 }
  0x10   : > { %v409_v12 = vld [vmem:[%s304_s15] sm:$0xf] }
  0x11   : > { %v410_v14 = vunpack.c.l.bf16 %v409_v12  ;;  %v552_v28 = vld [vmem:[%s736_s4] ss:$0 sm:$0xff] }
  0x12   : > { %564 = vmatpush3.bf16.msra.mxu0 %v600_v2  ;;  %v553_v30 = vld [vmem:[%s737_s5] ss:$0 sm:$0xff] }
  0x13   : > { %565 = vmatprep.subr.bf16.mxu0 %v629_v1 }
  0x14   : > { %v316_v6 = vld [vmem:[#allocation2] sm:$0xff] }
  0x16   : > { %566 = vmatpush3.bf16.msra.mxu0 %v601_v3 }
  0x17   : > { %567 = vmatprep.subr.bf16.mxu0 %v629_v1 }
  0x1a   : > { %568 = vmatpush3.bf16.msra.mxu0 %v602_v4 }
  0x1d   : > { %570 = vmatmul.mubr.msk.bf16.vlgmr.msra.gmra.mxu0 %vm350_vm2, %v317_v5 }
  0xdd   : > { %v388_v7 = vpop.f32.mrf.mxu0 }
  0xde   : > { %v394_v8 = vadd.f32 %v388_v7, %v316_v6 }
  0xdf   : > { %v571_v9 = vpop.f32.mrf.mxu0 }
  0xe0   : > { %396 = vst.msk [vmem:[#allocation2] sm:$0xff] %vm314_vm1, %v394_v8 }
  0xe1   : > { %v391_v10 = vpop.f32.mrf.mxu0 }
  0xe3   : > { %v572_v11 = vpop.f32.mrf.mxu0 }
  0xe7   : > { %v400_v15 = vld [vmem:[#allocation2] sm:$0xff] }
  0xe8   : > { %v408_v16 = vadd.f32 %v551_v13, %v400_v15 }
  0xea   : > { %v411_v17 = vadd.f32 %v410_v14, %v408_v16 }
  0xec   : > { %v412_v18 = vsel %vm314_vm1, %v411_v17, 0.0 }
  0xed   : > { %413 = vadd.xlane.f32.xlu0 %v412_v18 }
 0x176   : > { %v414_v19 = vpop.xlane.xlu0 %413 }
 0x177   : > { %v416_v20 = vmul.f32 0.03125, %v414_v19 }
 0x179   : > { %v417_v21 = vsub.f32 %v411_v17, %v416_v20 }
 0x17b   : > { %v418_v22 = vmul.f32 %v417_v21, %v417_v21 }
 0x17d   : > { %v419_v23 = vsel %vm314_vm1, %v418_v22, 0.0 }
 0x17e   : > { %420 = vadd.xlane.f32.xlu0 %v419_v23 }
 0x207   : > { %v421_v24 = vpop.xlane.xlu0 %420 }
 0x208   : > { %v422_v25 = vmul.f32 0.03125, %v421_v24 }
 0x20a   : > { %v423_v26 = vadd.f32 1e-05, %v422_v25 }
 0x20c   : > { %603 = vrsqrt.f32 %v423_v26 }
 0x219   : > { %v604_v27 = vpop.eup %603 }
 0x21a   : > { %v425_v29 = vmul.f32 %v604_v27, %v417_v21 }
 0x21c   : > { %v433_v31 = vmul.f32 %v552_v28, %v425_v29 }
 0x21e   : > { %v441_v32 = vadd.f32 %v553_v30, %v433_v31 }
 0x220   : > { %v442_v33 = vpack.c.bf16 %v441_v32, %v441_v32 }
 0x222   : > { %444 = vst.msk [vmem:[%s308_s27] sm:$0xf] %vm443_vm3, %v442_v33 }
 0x223 PF: > { %s16_s23 = sadd.s32 1, %s627_s23   ;;  %s739_s21 = smov %s623_s22 }
 0x224   : > { %p13_p5 = scmp.ge.s32.totalorder %s16_s23, 4   ;;  %s740_s22 = smov %s742_s24 }
 0x226   :  { %15 = sbr.rel (!%p13_p5) target bundleno = 2 (0x2), region = 88 }

// kernel: transformer_encoder.21
= control target key start
LH: loop header
LB: loop body
LE: loop exit
PB: predicated region body
PF: predicated region fallthrough
CT: control target
= control target key end

     0   :  { %8 = vsyncpa [#allocation3], 0  ;;  %s505_s0 = inlined_call_operand.vmem [shape: bf16[16,32], index: 0, kind: input, shape index: {}]   ;;  %s506_s1 = inlined_call_operand.vmem [shape: f32[1,32], index: 1, kind: input, shape index: {}]   ;;  %s507_s2 = inlined_call_operand.vmem [shape: f32[1,32], index: 2, kind: input, shape index: {}]   ;;  %s508_s3 = inlined_call_operand.hbm [shape: f32[16,32], index: 3, kind: output, shape index: {}]  }
   0x1   :  { %10 = vsyncpa [#allocation3 + $0x1], 0  ;;  %s409_s12 = smov 0   ;;  %s411_s13 = smov 0  }
   0x2   :  { %s413_s14 = smov 0   ;;  %s415_s15 = smov 0  }
   0x3 LB: > { %s430_s16 = sadd.s32 4294967295, %s386_s15   ;;  %s273_s17 = sadd.s32 4294967294, %s386_s15   ;;  %s386_s15 = sphi %s415_s15, %s514_s15   ;;  %s382_s14 = sphi %s413_s14, %s513_s14   ;;  %s378_s13 = sphi %s411_s13, %s512_s13   ;;  %s374_s12 = sphi %s409_s12, %s511_s12  }
   0x4   : > { %s434_s18 = sadd.s32 1, %s386_s15   ;;  %s91_s19 = sadd.s32 1, %s382_s14 }
   0x5   : > { %s88_s20 = ssub.s32 %s386_s15, %s434_s18  ;;  %p101_p0 = scmp.ne.s32.totalorder %s382_s14, %s378_s13 }
   0x6   : > { %p89_p1 = scmp.eq.s32.totalorder %s88_s20, 0  ;;  %p102_p2 = scmp.eq.s32.totalorder %s430_s16, 1 }
   0x7   : > { %p107_p3 = scmp.ne.s32.totalorder %s378_s13, %s374_s12  ;;  %p108_p4 = scmp.eq.s32.totalorder %s273_s17, 1 }
   0x8   : > { %s445_s21 = scalar_select %p89_p1, %s382_s14, %s91_s19  }
   0x9   : > { %p447_p5 = por %p102_p2, %p101_p0  ;;  %p451_p6 = por %p108_p4, %p107_p3 }
   0xa   : > { %p276_p7 = scmp.ge.s32.totalorder %s386_s15, 1  ;;  %p139_p8 = scmp.lt.s32.totalorder %s386_s15, 3 }
   0xc   : > { %p140_p9 = pnand %p276_p7, %p139_p8 }
   0xd   : > { %p162_p10 = scmp.lt.s32.totalorder (!%p140_p9), %s430_s16, 1  ;;  %s159_s29 = sand.u32 (!%p140_p9), 1, %s378_s13  }
   0xe   : > { %143 = sbr.rel (%p140_p9) target bundleno = 347 (0x15b), region = 32  ;;  %s277_s30 = sshll.u32 (!%p140_p9), %s159_s29, 3 }
   0xf   : > { %s282_s8 = sshll.u32 (!%p140_p9), %s430_s16, 7  ;;  %s161_s9 = scalar_lea.vmem (!%p140_p9), [#allocation2], %s277_s30 }
  0x10   : > { %s214_s10 = sshll.u32 (!%p140_p9), %s161_s9, 4  ;;  %s212_s19 = scalar_lea.hbm (!%p140_p9), %s508_s3, %s282_s8  ;;  %s215_s10 = int_to_ptr.vmem [resolvable:$true] %s214_s10 }
  0x11   : > { %s201_s20 = scalar_lea.sflag (!%p140_p9), [#allocation3], %s159_s29 }
  0x13   : > { %s163_s24 = scalar_select %p162_p10, %s430_s16, 1  ;;  %vm168_vm0 = vcmask 261120   ;;  %v279_v12 = vld [vmem:[%s506_s1] ss:$0 sm:$0xff] }
  0x14   : > { %v280_v14 = vld [vmem:[%s507_s2] ss:$0 sm:$0xff] }
  0x15   : > { %s278_s25 = sshll.u32 %s163_s24, 2  ;;  %s326_s24 = scalar_lea.vmem %s215_s10, 128 }
  0x16   : > { %s165_s28 = scalar_lea.vmem %s505_s0, %s278_s25  ;;  %p327_p11 = scmp.ne.s32.totalorder %s215_s10, %s326_s24 }
  0x17   : > { %v166_v0 = vld [vmem:[%s165_s28] sm:$0xf]  ;;  %s388_s25 = smov [#allocation2]  }
  0x18   : > { %v167_v1 = vunpack.c.l.bf16 %v166_v0  ;;  %p328_p12 = pnand %p327_p11, %p447_p5  ;;  %s330_s26 = sshll.u32 %s388_s25, 4  ;;  %s331_s26 = int_to_ptr.vmem [resolvable:$false] %s330_s26 }
  0x19   : > { %s332_s16 = scalar_lea.vmem %s331_s26, 256  ;;  %p333_p0 = scmp.lt.s32.totalorder %s215_s10, %s331_s26 }
  0x1a   : > { %v169_v2 = vsel %vm168_vm0, %v167_v1, 0.0  ;;  %p329_p13 = pneg %p328_p12  ;;  %p334_p1 = scmp.lt.s32.totalorder %s332_s16, %s326_s24 }
  0x1b   : > { %170 = vadd.xlane.f32.xlu0 %v169_v2 }
  0x1c   : > { %p335_p2 = por %p334_p1, %p333_p0 }
  0x1e   : > { %p336_p3 = pnand %p335_p2, %p329_p13 }
  0xa4   : > { %v171_v3 = vpop.xlane.xlu0 %170 }
  0xa5   : > { %v173_v4 = vmul.f32 0.03125, %v171_v3 }
  0xa7   : > { %v174_v5 = vsub.f32 %v167_v1, %v173_v4 }
  0xa9   : > { %v175_v6 = vmul.f32 %v174_v5, %v174_v5 }
  0xab   : > { %v176_v7 = vsel %vm168_vm0, %v175_v6, 0.0 }
  0xac   : > { %177 = vadd.xlane.f32.xlu0 %v176_v7 }
 0x135   : > { %v178_v8 = vpop.xlane.xlu0 %177 }
 0x136   : > { %v179_v9 = vmul.f32 0.03125, %v178_v8 }
 0x138   : > { %v180_v10 = vadd.f32 1e-05, %v179_v9 }
 0x13a   : > { %324 = vrsqrt.f32 %v180_v10 }
 0x147   : > { %v325_v11 = vpop.eup %324 }
 0x148   : > { %v182_v13 = vmul.f32 %v325_v11, %v174_v5 }
 0x14a   : > { %v190_v15 = vmul.f32 %v279_v12, %v182_v13 }
 0x14c   : > { %v198_v16 = vadd.f32 %v280_v14, %v190_v15 }
 0x14e   : > { %199 = vst.msk [vmem:[%s161_s9] sm:$0xff] %vm168_vm0, %v198_v16 }
 0x14f   : > { %339 = shalt.err (!%p336_p3)
}
 0x150   : > { %s340_s27 = scalar_lea.hbm %s212_s19, 128  ;;  %s344_s30 = scalar_lea.hbm %s508_s3, 256 }
 0x151   : > { %p341_p4 = scmp.ne.s32.totalorder %s212_s19, %s340_s27  ;;  %p345_p9 = scmp.lt.s32.totalorder %s212_s19, %s508_s3 }
 0x152   : > { %p346_p10 = scmp.lt.s32.totalorder %s344_s30, %s340_s27 }
 0x153   : > { %p342_p7 = pnand %p341_p4, %p447_p5 }
 0x154   : > { %p347_p11 = por %p346_p10, %p345_p9 }
 0x155   : > { %p343_p8 = pneg %p342_p7 }
 0x157   : > { %p348_p12 = pnand %p347_p11, %p343_p8 }
 0x159   : > { %351 = shalt.err (!%p348_p12)
}
 0x15a   : > { %285 = dma.vmem_to_hbm [thread:$0]  (%p447_p5), %s215_s10, 128, %s212_s19, %s201_s20  }
 0x15b PF: > { %p291_p13 = scmp.ge.s32.totalorder %s386_s15, 2  ;;  %s226_s6 = sand.u32 1, %s374_s12  }
 0x15c   : > { %s227_s7 = scalar_lea.sflag [#allocation3], %s226_s6 }
 0x15d   : > { %p288_p0 = pnand %p291_p13, %p451_p6 }
 0x15f   : > { %p289_p1 = pneg %p288_p0 }
 0x161   : > { %369 = dma.done.wait (%p289_p1), %s227_s7, 128  }
 0x162   : > { %371 = vsyncadd (%p289_p1), %s227_s7, 4294967168  ;;  %p13_p2 = scmp.ge.s32.totalorder %s434_s18, 4   ;;  %s511_s12 = smov %s378_s13 }
 0x163   : > { %s512_s13 = smov %s382_s14  ;;  %s513_s14 = smov %s445_s21 }
 0x164   : > { %s514_s15 = smov %s434_s18  ;;  %15 = sbr.rel (!%p13_p2) target bundleno = 3 (0x3), region = 67 }
 0x169   :  { %232 = vsyncpa [#allocation3], 1 }
 0x16a   :  { %234 = vsyncpa [#allocation3 + $0x1], 1 }

</bundles_post_ra>
